<compile_context>
chip_gen: v5e
topology: v5e:2x2
jax: 0.10.0
libtpu: 0.0.40
codegen_flags: <defaults>
</compile_context>

<pallas_src>
import functools

import jax
import jax.numpy as jnp
from jax.experimental import pallas as pl
from jax.experimental.pallas import tpu as pltpu


def _round_up(x, m):
    return ((x + m - 1) // m) * m


# ----------------------------------------------------------------------------
# Fused auto-encoder kernel: two GEMMs + bias/ReLU, batch on the MXU M dimension.
# ----------------------------------------------------------------------------
def _ae_gemm_kernel(x_ref, benc_ref, be_ref, bdec_ref, bd_ref, y_ref, xhat_ref):
    # Encoder: (B_BLK, Din) @ (Din, Dlat) on the MXU, f32 accumulation.
    y = jnp.dot(x_ref[...].astype(jnp.bfloat16), benc_ref[...],
                preferred_element_type=jnp.float32)
    y = jnp.maximum(y + be_ref[...], 0.0)          # bias + ReLU in f32 (VPU)
    y_ref[...] = y                                  # lane-dense store (Dlat = 512)

    # Decoder: (B_BLK, Dlat) @ (Dlat, Din); the latent never leaves VMEM/vregs.
    xhat = jnp.dot(y.astype(jnp.bfloat16), bdec_ref[...],
                   preferred_element_type=jnp.float32)
    xhat_ref[...] = xhat + bd_ref[...]              # lane-dense store (Din = 768)


# ----------------------------------------------------------------------------
# Wrapper: one fused pallas_call for the whole forward pass.
# ----------------------------------------------------------------------------
@functools.partial(jax.jit, static_argnames=("latent_chw",))
def _fused_forward(x, benc, be, bdec, bd, *, latent_chw):
    N, Cin, H, W = x.shape
    Clat, Ho, Wo = latent_chw
    Din = Cin * H * W
    Dlat = Clat * Ho * Wo

    # Batch blocking: batch rides the MXU M dimension; sublane-aligned blocks.
    B_BLK = min(256, _round_up(N, 8))
    N_pad = _round_up(N, B_BLK)

    x_flat = x.reshape(N, Din)                      # free reshape, channels-first
    if N_pad != N:
        x_flat = jnp.pad(x_flat, ((0, N_pad - N), (0, 0)))

    y_flat, xhat_flat = pl.pallas_call(
        _ae_gemm_kernel,
        out_shape=(jax.ShapeDtypeStruct((N_pad, Dlat), jnp.float32),
                   jax.ShapeDtypeStruct((N_pad, Din), jnp.float32)),
        grid=(N_pad // B_BLK,),
        in_specs=[
            pl.BlockSpec((B_BLK, Din), lambda n: (n, 0)),   # batch block of images
            pl.BlockSpec((Din, Dlat), lambda n: (0, 0)),    # encoder operator (resident)
            pl.BlockSpec((1, Dlat), lambda n: (0, 0)),      # encoder bias (resident)
            pl.BlockSpec((Dlat, Din), lambda n: (0, 0)),    # decoder operator (resident)
            pl.BlockSpec((1, Din), lambda n: (0, 0)),       # decoder bias (resident)
        ],
        out_specs=(
            pl.BlockSpec((B_BLK, Dlat), lambda n: (n, 0)),  # y, lane-dense
            pl.BlockSpec((B_BLK, Din), lambda n: (n, 0)),   # x_hat, lane-dense
        ),
        compiler_params=pltpu.CompilerParams(
            dimension_semantics=("parallel",)),             # v7x: batch blocks across TCs
    )(x_flat, benc, be, bdec, bd)

    y = y_flat[:N].reshape(N, Clat, Ho, Wo)        # NCHW via free reshape
    x_hat = xhat_flat[:N].reshape(N, Cin, H, W)
    return y, x_hat


# ----------------------------------------------------------------------------
# One-time weight prep: fold conv (+ upsample) into dense conv-as-GEMM operators.
# ----------------------------------------------------------------------------
def _build_operators(enc_w, enc_b, dec_w, dec_b, *, H, W, stride=2, pad=1, up=2):
    Clat, Cin, K, _ = enc_w.shape
    Ho, Wo = H // stride, W // stride
    Din, Dlat = Cin * H * W, Clat * Ho * Wo

    # Encoder operator: apply the (linear, bias-free) conv to the basis of R^Din.
    basis_x = jnp.eye(Din, dtype=jnp.float32).reshape(Din, Cin, H, W)
    enc_cols = jax.lax.conv_general_dilated(
        basis_x, enc_w, window_strides=(stride, stride),
        padding=((pad, pad), (pad, pad)),
        dimension_numbers=("NCHW", "OIHW", "NCHW"))
    benc = enc_cols.reshape(Din, Dlat)

    # Decoder operator: nearest x2 upsample + conv, applied to the latent basis.
    basis_y = jnp.eye(Dlat, dtype=jnp.float32).reshape(Dlat, Clat, Ho, Wo)
    basis_up = jnp.repeat(jnp.repeat(basis_y, up, axis=2), up, axis=3)
    dec_cols = jax.lax.conv_general_dilated(
        basis_up, dec_w, window_strides=(1, 1),
        padding=((pad, pad), (pad, pad)),
        dimension_numbers=("NCHW", "OIHW", "NCHW"))
    bdec = dec_cols.reshape(Dlat, Din)

    # bf16 MXU operands (f32 accumulation stays inside the kernel).
    benc = benc.astype(jnp.bfloat16)
    bdec = bdec.astype(jnp.bfloat16)

    # Flattened per-channel biases, kept f32 for the VPU adds.
    be = jnp.repeat(enc_b, Ho * Wo).reshape(1, Dlat).astype(jnp.float32)
    bd = jnp.repeat(dec_b, H * W).reshape(1, Din).astype(jnp.float32)
    return benc, be, bdec, bd, (Clat, Ho, Wo)


# ----------------------------------------------------------------------------
# VanillaAE: mirrors the PyTorch module's forward contract.
# ----------------------------------------------------------------------------
class VanillaAE:
    def __init__(self, params, *, image_hw=(16, 16)):
        H, W = image_hw
        self.params = params
        (self._benc, self._be, self._bdec, self._bd,
         self._latent_chw) = _build_operators(
            params["enc_w"], params["enc_b"], params["dec_w"], params["dec_b"],
            H=H, W=W)
        self._latent_channels = self._latent_chw[0]

    @property
    def latent_channels(self):
        return self._latent_channels

    def forward(self, x):
        y, x_hat = _fused_forward(x, self._benc, self._be, self._bdec, self._bd,
                                  latent_chw=self._latent_chw)
        return {"y": y, "x_hat": x_hat}


def make_params():
    """Deterministic synthetic parameters (no checkpoint loading)."""
    k = jax.random.PRNGKey(0)
    k1, k2, k3, k4 = jax.random.split(k, 4)
    latent = 8
    return {
        "enc_w": 0.1 * jax.random.normal(k1, (latent, 3, 3, 3), jnp.float32),
        "enc_b": 0.01 * jax.random.normal(k2, (latent,), jnp.float32),
        "dec_w": 0.1 * jax.random.normal(k3, (3, latent, 3, 3), jnp.float32),
        "dec_b": 0.01 * jax.random.normal(k4, (3,), jnp.float32),
    }


if __name__ == "__main__":
    params = make_params()
    model = VanillaAE(params, image_hw=(16, 16))

    # Small NCHW input consistent with the module (images, 3 channels).
    x = jax.random.normal(jax.random.PRNGKey(0), (2, 3, 16, 16), jnp.float32)

    out = model.forward(x)
    jax.block_until_ready(out["x_hat"])

    # Same contract checked in the PyTorch __init__: roundtrip preserves shape.
    assert out["x_hat"].shape == x.shape, (out["x_hat"].shape, x.shape)
    assert out["y"].shape == (2, model.latent_channels, 8, 8), out["y"].shape

    # Encoder reference (XLA conv, f32).  bf16 MXU operands => looser tolerance.
    ref_y = jax.lax.conv_general_dilated(
        x, params["enc_w"], window_strides=(2, 2), padding=((1, 1), (1, 1)),
        dimension_numbers=("NCHW", "OIHW", "NCHW"))
    ref_y = jnp.maximum(ref_y + params["enc_b"][None, :, None, None], 0.0)
    assert jnp.allclose(out["y"], ref_y, atol=2e-2, rtol=2e-2), "encoder mismatch"

    # Decoder reference: nearest x2 upsample + conv3x3 stride1 pad1 (XLA, f32).
    ref_up = jnp.repeat(jnp.repeat(ref_y, 2, axis=2), 2, axis=3)
    ref_xhat = jax.lax.conv_general_dilated(
        ref_up, params["dec_w"], window_strides=(1, 1), padding=((1, 1), (1, 1)),
        dimension_numbers=("NCHW", "OIHW", "NCHW"))
    ref_xhat = ref_xhat + params["dec_b"][None, :, None, None]
    assert jnp.allclose(out["x_hat"], ref_xhat, atol=2e-2, rtol=2e-2), "decoder mismatch"

    print("KERNEL_OK")
</pallas_src>

<mosaic_0001>
module attributes {stable_mosaic.version = 11 : i64} {
  func.func @_ae_gemm_kernel(%arg0: i32, %arg1: memref<8x768xf32, #tpu.memory_space<vmem>>, %arg2: memref<768x512xbf16, #tpu.memory_space<vmem>>, %arg3: memref<1x512xf32, #tpu.memory_space<vmem>>, %arg4: memref<512x768xbf16, #tpu.memory_space<vmem>>, %arg5: memref<1x768xf32, #tpu.memory_space<vmem>>, %arg6: memref<8x512xf32, #tpu.memory_space<vmem>>, %arg7: memref<8x768xf32, #tpu.memory_space<vmem>>) attributes {dimension_semantics = [#tpu.dimension_semantics<parallel>], iteration_bounds = array<i64: 1>, scalar_prefetch = 0 : i64, scratch_operands = 0 : i64, tpu.core_type = #tpu.core_type<tc>, window_params = [{transform_indices = @transform_0, window_bounds = array<i64: 8, 768>}, {pipeline_mode = #tpu.pipeline_mode<synchronous>, transform_indices = @transform_1, window_bounds = array<i64: 768, 512>}, {pipeline_mode = #tpu.pipeline_mode<synchronous>, transform_indices = @transform_2, window_bounds = array<i64: 1, 512>}, {pipeline_mode = #tpu.pipeline_mode<synchronous>, transform_indices = @transform_3, window_bounds = array<i64: 512, 768>}, {pipeline_mode = #tpu.pipeline_mode<synchronous>, transform_indices = @transform_4, window_bounds = array<i64: 1, 768>}, {transform_indices = @transform_5, window_bounds = array<i64: 8, 512>}, {transform_indices = @transform_6, window_bounds = array<i64: 8, 768>}]} {
    %c0 = arith.constant 0 : index
    %c0_0 = arith.constant 0 : index
    %0 = vector.load %arg1[%c0, %c0_0] : memref<8x768xf32, #tpu.memory_space<vmem>>, vector<8x768xf32>
    %1 = arith.truncf %0 : vector<8x768xf32> to vector<8x768xbf16>
    %c0_1 = arith.constant 0 : index
    %c0_2 = arith.constant 0 : index
    %2 = vector.load %arg2[%c0_1, %c0_2] : memref<768x512xbf16, #tpu.memory_space<vmem>>, vector<768x512xbf16>
    %cst = arith.constant dense<0.000000e+00> : vector<8x512xf32>
    %3 = tpu.matmul %1, %2, %cst {dimension_numbers = #tpu.dot_dimension_numbers<[1], [0], [0], [1], [0, 0, 1, 1], [], []>} : vector<8x768xbf16>, vector<768x512xbf16>, vector<8x512xf32> -> vector<8x512xf32>
    %c0_3 = arith.constant 0 : index
    %c0_4 = arith.constant 0 : index
    %4 = vector.load %arg3[%c0_3, %c0_4] : memref<1x512xf32, #tpu.memory_space<vmem>>, vector<1x512xf32>
    %5 = vector.broadcast %4 : vector<1x512xf32> to vector<8x512xf32>
    %6 = arith.addf %3, %5 : vector<8x512xf32>
    %cst_5 = arith.constant 0.000000e+00 : f32
    %7 = vector.broadcast %cst_5 : f32 to vector<8x512xf32>
    %8 = arith.maximumf %6, %7 : vector<8x512xf32>
    %c0_6 = arith.constant 0 : index
    %c0_7 = arith.constant 0 : index
    %9 = vector.load %arg6[%c0_6, %c0_7] : memref<8x512xf32, #tpu.memory_space<vmem>>, vector<8x512xf32>
    tpu.vector_store %arg6[%c0_6, %c0_7], %8 {strides = array<i32>} : memref<8x512xf32, #tpu.memory_space<vmem>>, vector<8x512xf32>,
    %10 = arith.truncf %8 : vector<8x512xf32> to vector<8x512xbf16>
    %c0_8 = arith.constant 0 : index
    %c0_9 = arith.constant 0 : index
    %11 = vector.load %arg4[%c0_8, %c0_9] : memref<512x768xbf16, #tpu.memory_space<vmem>>, vector<512x768xbf16>
    %cst_10 = arith.constant dense<0.000000e+00> : vector<8x768xf32>
    %12 = tpu.matmul %10, %11, %cst_10 {dimension_numbers = #tpu.dot_dimension_numbers<[1], [0], [0], [1], [0, 0, 1, 1], [], []>} : vector<8x512xbf16>, vector<512x768xbf16>, vector<8x768xf32> -> vector<8x768xf32>
    %c0_11 = arith.constant 0 : index
    %c0_12 = arith.constant 0 : index
    %13 = vector.load %arg5[%c0_11, %c0_12] : memref<1x768xf32, #tpu.memory_space<vmem>>, vector<1x768xf32>
    %14 = vector.broadcast %13 : vector<1x768xf32> to vector<8x768xf32>
    %15 = arith.addf %12, %14 : vector<8x768xf32>
    %c0_13 = arith.constant 0 : index
    %c0_14 = arith.constant 0 : index
    %16 = vector.load %arg7[%c0_13, %c0_14] : memref<8x768xf32, #tpu.memory_space<vmem>>, vector<8x768xf32>
    tpu.vector_store %arg7[%c0_13, %c0_14], %15 {strides = array<i32>} : memref<8x768xf32, #tpu.memory_space<vmem>>, vector<8x768xf32>,
    return
  }
  func.func @transform_0(%arg0: i32) -> (i32, i32) {
    %c0_i32 = arith.constant 0 : i32
    %c0_i32_0 = arith.constant 0 : i32
    return %arg0, %c0_i32 : i32, i32
  }
  func.func @transform_1(%arg0: i32) -> (i32, i32) {
    %c0_i32 = arith.constant 0 : i32
    %c0_i32_0 = arith.constant 0 : i32
    %c0_i32_1 = arith.constant 0 : i32
    return %c0_i32, %c0_i32_0 : i32, i32
  }
  func.func @transform_2(%arg0: i32) -> (i32, i32) {
    %c0_i32 = arith.constant 0 : i32
    %c0_i32_0 = arith.constant 0 : i32
    %c0_i32_1 = arith.constant 0 : i32
    return %c0_i32, %c0_i32_0 : i32, i32
  }
  func.func @transform_3(%arg0: i32) -> (i32, i32) {
    %c0_i32 = arith.constant 0 : i32
    %c0_i32_0 = arith.constant 0 : i32
    %c0_i32_1 = arith.constant 0 : i32
    return %c0_i32, %c0_i32_0 : i32, i32
  }
  func.func @transform_4(%arg0: i32) -> (i32, i32) {
    %c0_i32 = arith.constant 0 : i32
    %c0_i32_0 = arith.constant 0 : i32
    %c0_i32_1 = arith.constant 0 : i32
    return %c0_i32, %c0_i32_0 : i32, i32
  }
  func.func @transform_5(%arg0: i32) -> (i32, i32) {
    %c0_i32 = arith.constant 0 : i32
    %c0_i32_0 = arith.constant 0 : i32
    return %arg0, %c0_i32 : i32, i32
  }
  func.func @transform_6(%arg0: i32) -> (i32, i32) {
    %c0_i32 = arith.constant 0 : i32
    %c0_i32_0 = arith.constant 0 : i32
    return %arg0, %c0_i32 : i32, i32
  }
}

</mosaic_0001>

<bundles_post_ra>
// kernel: _fused_forward.1
= control target key start
LH: loop header
LB: loop body
LE: loop exit
PB: predicated region body
PF: predicated region fallthrough
CT: control target
= control target key end

     0   :  { %12 = vsyncpa [#allocation3], 0  ;;  %s5243_s0 = inlined_call_operand.vmem [shape: f32[8,768], index: 0, kind: input, shape index: {}]   ;;  %s5244_s1 = inlined_call_operand.hbm [shape: bf16[768,512], index: 1, kind: input, shape index: {}]   ;;  %s5245_s2 = inlined_call_operand.vmem [shape: f32[1,512], index: 2, kind: input, shape index: {}]   ;;  %s5246_s3 = inlined_call_operand.hbm [shape: bf16[512,768], index: 3, kind: input, shape index: {}]   ;;  %s5247_s4 = inlined_call_operand.vmem [shape: f32[1,768], index: 4, kind: input, shape index: {}]   ;;  %s5248_s5 = inlined_call_operand.vmem [shape: f32[8,512], index: 5, kind: output, shape index: {0}]   ;;  %s5249_s6 = inlined_call_operand.vmem [shape: f32[8,768], index: 6, kind: output, shape index: {1}]  }
   0x1   :  { %s20_s23 = sshll.u32 %s5244_s1, 4  ;;  %s21_s23 = int_to_ptr.hbm [resolvable:$true] %s20_s23 }
   0x2   :  { %13 = vsyncpa [#allocation5], 0  ;;  %s5025_s24 = smov [#allocation2]   ;;  %s35_s28 = sshll.u32 %s5246_s3, 4  ;;  %s36_s28 = int_to_ptr.hbm [resolvable:$true] %s35_s28 }
   0x3   :  { %s22_s25 = sshll.u32 %s5025_s24, 4  ;;  %s5026_s29 = smov 256   ;;  %s23_s25 = int_to_ptr.vmem [resolvable:$true] %s22_s25 }
   0x4   :  { %s5027_s30 = smov 16   ;;  %s5028_s7 = smov [#allocation4]  }
   0x5   :  { %28 = dma.hbm_to_vmem [thread:$0]  %s21_s23, 24576, %s23_s25, [#allocation3], %s5026_s29, %s5026_s29, %s5027_s30  }
   0x6   :  { %s37_s8 = sshll.u32 %s5028_s7, 4  ;;  %s5029_s9 = smov 384   ;;  %s38_s8 = int_to_ptr.vmem [resolvable:$true] %s37_s8 }
   0x7   :  { %s5030_s10 = smov 24  }
   0x8   :  { %43 = dma.hbm_to_vmem [thread:$0]  %s36_s28, 24576, %s38_s8, [#allocation5], %s5029_s9, %s5029_s9, %s5030_s10  }
   0x9   :  { %5021 = dma.done.wait [#allocation3], 24576  }
   0xa   :  { %5022 = vsyncadd [#allocation3], 4294942720 }
   0xb   :  { %5023 = dma.done.wait [#allocation5], 24576  }
   0xc   :  { %5024 = vsyncadd [#allocation5], 4294942720  ;;  %v3160_v0 = vld [vmem:[#allocation2 + $0xe0] sm:$0xf]  ;;  %v4612_v1 = vld [vmem:[#allocation2 + $0xec] sm:$0xf0] }
   0xd   :  { %v3288_v2 = vld [vmem:[#allocation2 + $0x1e0] sm:$0xf]  ;;  %v3161_v3 = vor.u32 %v4612_v1, %v3160_v0  ;;  %v4644_v4 = vld [vmem:[#allocation2 + $0x1ec] sm:$0xf0] }
   0xe   :  { %v3416_v5 = vld [vmem:[#allocation2 + $0x2e0] sm:$0xf]  ;;  %v4676_v6 = vld [vmem:[#allocation2 + $0x2ec] sm:$0xf0]  ;;  %v3289_v7 = vor.u32 %v4644_v4, %v3288_v2 }
   0xf   :  { %v3417_v8 = vor.u32 %v4676_v6, %v3416_v5  ;;  %v3544_v9 = vld [vmem:[#allocation2 + $0x3e0] sm:$0xf]  ;;  %v4708_v10 = vld [vmem:[#allocation2 + $0x3ec] sm:$0xf0]  ;;  %1228 = vmatpush.bf16.msra.mxu0 %v3161_v3 }
  0x10   :  { %v3144_v11 = vld [vmem:[#allocation2 + $0xc0] sm:$0xf]  ;;  %v3545_v12 = vor.u32 %v4708_v10, %v3544_v9  ;;  %v4608_v13 = vld [vmem:[#allocation2 + $0xcc] sm:$0xf0]  ;;  %1241 = vmatpush.bf16.msra.mxu1 %v3289_v7 }
  0x11   :  { %v3272_v14 = vld [vmem:[#allocation2 + $0x1c0] sm:$0xf]  ;;  %v4640_v15 = vld [vmem:[#allocation2 + $0x1cc] sm:$0xf0]  ;;  %1254 = vmatpush.bf16.msra.mxu2 %v3417_v8  ;;  %v3145_v16 = vor.u32 %v4608_v13, %v3144_v11 }
  0x12   :  { %v3273_v17 = vor.u32 %v4640_v15, %v3272_v14  ;;  %v3400_v18 = vld [vmem:[#allocation2 + $0x2c0] sm:$0xf]  ;;  %v4672_v19 = vld [vmem:[#allocation2 + $0x2cc] sm:$0xf0]  ;;  %1267 = vmatpush.bf16.msra.mxu3 %v3545_v12 }
  0x13   :  { %v3528_v20 = vld [vmem:[#allocation2 + $0x3c0] sm:$0xf]  ;;  %v3401_v21 = vor.u32 %v4672_v19, %v3400_v18  ;;  %v4704_v22 = vld [vmem:[#allocation2 + $0x3cc] sm:$0xf0]  ;;  %1229 = vmatpush.bf16.msra.mxu0 %v3145_v16 }
  0x14   :  { %v3128_v23 = vld [vmem:[#allocation2 + $0xa0] sm:$0xf]  ;;  %v4604_v24 = vld [vmem:[#allocation2 + $0xac] sm:$0xf0]  ;;  %v3529_v25 = vor.u32 %v4704_v22, %v3528_v20  ;;  %1242 = vmatpush.bf16.msra.mxu1 %v3273_v17 }
  0x15   :  { %v3256_v26 = vld [vmem:[#allocation2 + $0x1a0] sm:$0xf]  ;;  %v4636_v27 = vld [vmem:[#allocation2 + $0x1ac] sm:$0xf0]  ;;  %v3129_v29 = vor.u32 %v4604_v24, %v3128_v23  ;;  %1255 = vmatpush.bf16.msra.mxu2 %v3401_v21 }
  0x16   :  { %v3384_v28 = vld [vmem:[#allocation2 + $0x2a0] sm:$0xf]  ;;  %v4668_v30 = vld [vmem:[#allocation2 + $0x2ac] sm:$0xf0]  ;;  %v3257_v33 = vor.u32 %v4636_v27, %v3256_v26  ;;  %1268 = vmatpush.bf16.msra.mxu3 %v3529_v25 }
  0x17   :  { %v3512_v31 = vld [vmem:[#allocation2 + $0x3a0] sm:$0xf]  ;;  %v4700_v32 = vld [vmem:[#allocation2 + $0x3ac] sm:$0xf0]  ;;  %v3385_v34 = vor.u32 %v4668_v30, %v3384_v28  ;;  %1230 = vmatpush.bf16.msra.mxu0 %v3129_v29 }
  0x18   :  { %v3112_v35 = vld [vmem:[#allocation2 + $0x80] sm:$0xf]  ;;  %v4600_v36 = vld [vmem:[#allocation2 + $0x8c] sm:$0xf0]  ;;  %v3513_v38 = vor.u32 %v4700_v32, %v3512_v31  ;;  %1243 = vmatpush.bf16.msra.mxu1 %v3257_v33  ;;  %v4610_v33 = vld [vmem:[#allocation2 + $0xe4] sm:$0xf] }
  0x19   :  { %v3240_v37 = vld [vmem:[#allocation2 + $0x180] sm:$0xf]  ;;  %v4632_v39 = vld [vmem:[#allocation2 + $0x18c] sm:$0xf0]  ;;  %v3113_v44 = vor.u32 %v4600_v36, %v3112_v35  ;;  %1256 = vmatpush.bf16.msra.mxu2 %v3385_v34  ;;  %v3162_v34 = vld [vmem:[#allocation2 + $0xf0] sm:$0xf0] }
  0x1a   :  { %v3368_v40 = vld [vmem:[#allocation2 + $0x280] sm:$0xf]  ;;  %v4664_v41 = vld [vmem:[#allocation2 + $0x28c] sm:$0xf0]  ;;  %v3241_v45 = vor.u32 %v4632_v39, %v3240_v37  ;;  %1269 = vmatpush.bf16.msra.mxu3 %v3513_v38  ;;  %v4642_v37 = vld [vmem:[#allocation2 + $0x1e4] sm:$0xf] }
  0x1b   :  { %v3496_v42 = vld [vmem:[#allocation2 + $0x380] sm:$0xf]  ;;  %v4696_v43 = vld [vmem:[#allocation2 + $0x38c] sm:$0xf0]  ;;  %v3369_v46 = vor.u32 %v4664_v41, %v3368_v40  ;;  %1231 = vmatpush.bf16.msra.mxu0 %v3113_v44  ;;  %v3290_v38 = vld [vmem:[#allocation2 + $0x1f0] sm:$0xf0] }
  0x1c   :  { %v3096_v47 = vld [vmem:[#allocation2 + $0x60] sm:$0xf]  ;;  %v4596_v48 = vld [vmem:[#allocation2 + $0x6c] sm:$0xf0]  ;;  %v3497_v50 = vor.u32 %v4696_v43, %v3496_v42  ;;  %1244 = vmatpush.bf16.msra.mxu1 %v3241_v45  ;;  %v3165_v42 = vor.u32 %v4610_v33, %v3162_v34 }
  0x1d   :  { %v3224_v49 = vld [vmem:[#allocation2 + $0x160] sm:$0xf]  ;;  %v4628_v51 = vld [vmem:[#allocation2 + $0x16c] sm:$0xf0]  ;;  %v3097_v56 = vor.u32 %v4596_v48, %v3096_v47  ;;  %1257 = vmatpush.bf16.msra.mxu2 %v3369_v46  ;;  %v3293_v46 = vor.u32 %v4642_v37, %v3290_v38  ;;  %v4606_v48 = vld [vmem:[#allocation2 + $0xc4] sm:$0xf] }
  0x1e   :  { %v3352_v52 = vld [vmem:[#allocation2 + $0x260] sm:$0xf]  ;;  %v4660_v53 = vld [vmem:[#allocation2 + $0x26c] sm:$0xf0]  ;;  %v3225_v57 = vor.u32 %v4628_v51, %v3224_v49  ;;  %1270 = vmatpush.bf16.msra.mxu3 %v3497_v50  ;;  %v3146_v49 = vld [vmem:[#allocation2 + $0xd0] sm:$0xf0] }
  0x1f   :  { %v3480_v54 = vld [vmem:[#allocation2 + $0x360] sm:$0xf]  ;;  %v4692_v55 = vld [vmem:[#allocation2 + $0x36c] sm:$0xf0]  ;;  %v3353_v58 = vor.u32 %v4660_v53, %v3352_v52  ;;  %1232 = vmatpush.bf16.msra.mxu0 %v3097_v56  ;;  %v4638_v50 = vld [vmem:[#allocation2 + $0x1c4] sm:$0xf] }
  0x20   :  { %v3080_v59 = vld [vmem:[#allocation2 + $0x40] sm:$0xf]  ;;  %v4592_v60 = vld [vmem:[#allocation2 + $0x4c] sm:$0xf0]  ;;  %v3481_v62 = vor.u32 %v4692_v55, %v3480_v54  ;;  %1245 = vmatpush.bf16.msra.mxu1 %v3225_v57  ;;  %v3274_v51 = vld [vmem:[#allocation2 + $0x1d0] sm:$0xf0]  ;;  %v3149_v55 = vor.u32 %v4606_v48, %v3146_v49 }
  0x21   :  { %v3208_v61 = vld [vmem:[#allocation2 + $0x140] sm:$0xf]  ;;  %v4624_v63 = vld [vmem:[#allocation2 + $0x14c] sm:$0xf0]  ;;  %v3081_v4 = vor.u32 %v4592_v60, %v3080_v59  ;;  %1258 = vmatpush.bf16.msra.mxu2 %v3353_v58  ;;  %v3277_v59 = vor.u32 %v4638_v50, %v3274_v51  ;;  %v4602_v60 = vld [vmem:[#allocation2 + $0xa4] sm:$0xf] }
  0x22   :  { %v3336_v0 = vld [vmem:[#allocation2 + $0x240] sm:$0xf]  ;;  %v4656_v1 = vld [vmem:[#allocation2 + $0x24c] sm:$0xf0]  ;;  %v3209_v5 = vor.u32 %v4624_v63, %v3208_v61  ;;  %1271 = vmatpush.bf16.msra.mxu3 %v3481_v62  ;;  %v3130_v61 = vld [vmem:[#allocation2 + $0xb0] sm:$0xf0] }
  0x23   :  { %v3464_v2 = vld [vmem:[#allocation2 + $0x340] sm:$0xf]  ;;  %v4688_v3 = vld [vmem:[#allocation2 + $0x34c] sm:$0xf0]  ;;  %v3337_v6 = vor.u32 %v4656_v1, %v3336_v0  ;;  %1233 = vmatpush.bf16.msra.mxu0 %v3081_v4  ;;  %v4634_v62 = vld [vmem:[#allocation2 + $0x1a4] sm:$0xf] }
  0x24   :  { %v3064_v7 = vld [vmem:[#allocation2 + $0x20] sm:$0xf]  ;;  %v4588_v8 = vld [vmem:[#allocation2 + $0x2c] sm:$0xf0]  ;;  %v3465_v10 = vor.u32 %v4688_v3, %v3464_v2  ;;  %1246 = vmatpush.bf16.msra.mxu1 %v3209_v5  ;;  %v3258_v63 = vld [vmem:[#allocation2 + $0x1b0] sm:$0xf0]  ;;  %v3133_v5 = vor.u32 %v4602_v60, %v3130_v61 }
  0x25   :  { %v3192_v9 = vld [vmem:[#allocation2 + $0x120] sm:$0xf]  ;;  %v4620_v11 = vld [vmem:[#allocation2 + $0x12c] sm:$0xf0]  ;;  %v3065_v16 = vor.u32 %v4588_v8, %v3064_v7  ;;  %1259 = vmatpush.bf16.msra.mxu2 %v3337_v6 }
  0x26   :  { %v3320_v12 = vld [vmem:[#allocation2 + $0x220] sm:$0xf]  ;;  %v4652_v13 = vld [vmem:[#allocation2 + $0x22c] sm:$0xf0]  ;;  %v3193_v19 = vor.u32 %v4620_v11, %v3192_v9  ;;  %1272 = vmatpush.bf16.msra.mxu3 %v3465_v10  ;;  %v57_v10 = vld [vmem:[%s5243_s0 + $0x18] sm:$0xff]  ;;  %v3261_v11 = vor.u32 %v4634_v62, %v3258_v63 }
  0x27   :  { %v3448_v14 = vld [vmem:[#allocation2 + $0x320] sm:$0xf]  ;;  %v4684_v15 = vld [vmem:[#allocation2 + $0x32c] sm:$0xf0]  ;;  %v3321_v20 = vor.u32 %v4652_v13, %v3320_v12  ;;  %1234 = vmatpush.bf16.msra.mxu0 %v3065_v16  ;;  %v4598_v13 = vld [vmem:[#allocation2 + $0x84] sm:$0xf] }
  0x28   :  { %v3048_v17 = vld [vmem:[#allocation2] sm:$0xf]  ;;  %v4584_v18 = vld [vmem:[#allocation2 + $0xc] sm:$0xf0]  ;;  %v3449_v24 = vor.u32 %v4684_v15, %v3448_v14  ;;  %1247 = vmatpush.bf16.msra.mxu1 %v3193_v19  ;;  %v3114_v14 = vld [vmem:[#allocation2 + $0x90] sm:$0xf0]  ;;  %v5085_v15 = vpack.c.bf16 %v57_v10, %v57_v10 }
  0x29   :  { %v3176_v21 = vld [vmem:[#allocation2 + $0x100] sm:$0xf]  ;;  %v4616_v22 = vld [vmem:[#allocation2 + $0x10c] sm:$0xf0]  ;;  %v3049_v31 = vor.u32 %v4584_v18, %v3048_v17  ;;  %1260 = vmatpush.bf16.msra.mxu2 %v3321_v20  ;;  %v4630_v16 = vld [vmem:[#allocation2 + $0x184] sm:$0xf] }
  0x2a   :  { %v3304_v23 = vld [vmem:[#allocation2 + $0x200] sm:$0xf]  ;;  %v4648_v25 = vld [vmem:[#allocation2 + $0x20c] sm:$0xf0]  ;;  %v3177_v35 = vor.u32 %v4616_v22, %v3176_v21  ;;  %1273 = vmatpush.bf16.msra.mxu3 %v3449_v24  ;;  %v3242_v17 = vld [vmem:[#allocation2 + $0x190] sm:$0xf0]  ;;  %v3117_v21 = vor.u32 %v4598_v13, %v3114_v14 }
  0x2b   :  { %v3432_v26 = vld [vmem:[#allocation2 + $0x300] sm:$0xf]  ;;  %v4680_v27 = vld [vmem:[#allocation2 + $0x30c] sm:$0xf0]  ;;  %v3305_v36 = vor.u32 %v4648_v25, %v3304_v23  ;;  %1235 = vmatpush.bf16.msra.mxu0 %v3049_v31  ;;  %v55_v19 = vld [vmem:[%s5243_s0 + $0x8] sm:$0xff] }
  0x2c   :  { %v3672_v28 = vld [vmem:[#allocation2 + $0x4e0] sm:$0xf]  ;;  %v4740_v29 = vld [vmem:[#allocation2 + $0x4ec] sm:$0xf0]  ;;  %v3433_v39 = vor.u32 %v4680_v27, %v3432_v26  ;;  %1248 = vmatpush.bf16.msra.mxu1 %v3177_v35  ;;  %v5093_v25 = vpack.c.bf16 %v55_v19, %v55_v19  ;;  %v3245_v26 = vor.u32 %v4630_v16, %v3242_v17  ;;  %v3226_v31 = vld [vmem:[#allocation2 + $0x170] sm:$0xf0] }
  0x2d   :  { %v3800_v30 = vld [vmem:[#allocation2 + $0x5e0] sm:$0xf]  ;;  %v4772_v32 = vld [vmem:[#allocation2 + $0x5ec] sm:$0xf0]  ;;  %v3673_v40 = vor.u32 %v4740_v29, %v3672_v28  ;;  %1261 = vmatpush.bf16.msra.mxu2 %v3305_v36  ;;  %v4594_v28 = vld [vmem:[#allocation2 + $0x64] sm:$0xf] }
  0x2e   :  { %v3801_v41 = vor.u32 %v4772_v32, %v3800_v30  ;;  %v3656_v43 = vld [vmem:[#allocation2 + $0x4c0] sm:$0xf]  ;;  %v4736_v44 = vld [vmem:[#allocation2 + $0x4cc] sm:$0xf0]  ;;  %1274 = vmatpush.bf16.msra.mxu3 %v3433_v39  ;;  %v3098_v29 = vld [vmem:[#allocation2 + $0x70] sm:$0xf0] }
  0x2f   :  { %v3784_v45 = vld [vmem:[#allocation2 + $0x5c0] sm:$0xf]  ;;  %v4768_v47 = vld [vmem:[#allocation2 + $0x5cc] sm:$0xf0]  ;;  %1280 = vmatpush.bf16.msrb.mxu0 %v3673_v40  ;;  %v3657_v52 = vor.u32 %v4736_v44, %v3656_v43  ;;  %v4626_v30 = vld [vmem:[#allocation2 + $0x164] sm:$0xf]  ;;  %1249 = vmatmul.bf16.vlgmr.msra.gmra.mxu1 %v5093_v25  ;;  %v3101_v34 = vor.u32 %v4594_v28, %v3098_v29 }
  0x30   :  { %v3640_v53 = vld [vmem:[#allocation2 + $0x4a0] sm:$0xf]  ;;  %1293 = vmatpush.bf16.msrb.mxu1 %v3801_v41  ;;  %v3785_v54 = vor.u32 %v4768_v47, %v3784_v45  ;;  %v4732_v56 = vld [vmem:[#allocation2 + $0x4ac] sm:$0xf0]  ;;  %v3229_v38 = vor.u32 %v4626_v30, %v3226_v31  ;;  %v4590_v40 = vld [vmem:[#allocation2 + $0x44] sm:$0xf] }
  0x31   :  { %1306 = vmatpush.bf16.msrb.mxu2 %v3165_v42  ;;  %v3768_v57 = vld [vmem:[#allocation2 + $0x5a0] sm:$0xf]  ;;  %v4764_v58 = vld [vmem:[#allocation2 + $0x5ac] sm:$0xf0]  ;;  %v3641_v0 = vor.u32 %v4732_v56, %v3640_v53  ;;  %1275 = vmatmul.bf16.vlgmr.msra.gmra.mxu3 %v5085_v15  ;;  %v3082_v41 = vld [vmem:[#allocation2 + $0x50] sm:$0xf0] }
  0x32   :  { %1319 = vmatpush.bf16.msrb.mxu3 %v3293_v46  ;;  %v3769_v1 = vor.u32 %v4764_v58, %v3768_v57  ;;  %v3624_v2 = vld [vmem:[#allocation2 + $0x480] sm:$0xf]  ;;  %v56_v3 = vld [vmem:[%s5243_s0 + $0x10] sm:$0xff]  ;;  %v4622_v42 = vld [vmem:[#allocation2 + $0x144] sm:$0xf]  ;;  %v3085_v46 = vor.u32 %v4590_v40, %v3082_v41 }
  0x33   :  { %1281 = vmatpush.bf16.msrb.mxu0 %v3657_v52  ;;  %v54_v4 = vld [vmem:[%s5243_s0] sm:$0xff]  ;;  %v4728_v6 = vld [vmem:[#allocation2 + $0x48c] sm:$0xf0]  ;;  %v5078_v8 = vpack.c.bf16 %v56_v3, %v56_v3  ;;  %v3210_v43 = vld [vmem:[#allocation2 + $0x150] sm:$0xf0] }
  0x34   :  { %1294 = vmatpush.bf16.msrb.mxu1 %v3785_v54  ;;  %v3752_v7 = vld [vmem:[#allocation2 + $0x580] sm:$0xf]  ;;  %v5080_v9 = vpack.c.bf16 %v54_v4, %v54_v4  ;;  %v4760_v12 = vld [vmem:[#allocation2 + $0x58c] sm:$0xf0]  ;;  %v3625_v18 = vor.u32 %v4728_v6, %v3624_v2  ;;  %v3213_v50 = vor.u32 %v4622_v42, %v3210_v43  ;;  %v4586_v52 = vld [vmem:[#allocation2 + $0x24] sm:$0xf] }
  0x35   :  { %1307 = vmatpush.bf16.msrb.mxu2 %v3149_v55  ;;  %v3753_v20 = vor.u32 %v4760_v12, %v3752_v7  ;;  %v3608_v22 = vld [vmem:[#allocation2 + $0x460] sm:$0xf]  ;;  %v4724_v23 = vld [vmem:[#allocation2 + $0x46c] sm:$0xf0]  ;;  %v3066_v53 = vld [vmem:[#allocation2 + $0x30] sm:$0xf0] }
  0x36   :  { %1320 = vmatpush.bf16.msrb.mxu3 %v3277_v59  ;;  %1262 = vmatmul.bf16.vlgmr.msra.gmra.mxu2 %v5078_v8  ;;  %v3736_v24 = vld [vmem:[#allocation2 + $0x560] sm:$0xf]  ;;  %v4756_v27 = vld [vmem:[#allocation2 + $0x56c] sm:$0xf0]  ;;  %v3609_v32 = vor.u32 %v4724_v23, %v3608_v22  ;;  %v4618_v54 = vld [vmem:[#allocation2 + $0x124] sm:$0xf]  ;;  %v3069_v60 = vor.u32 %v4586_v52, %v3066_v53 }
  0x37   :  { %1236 = vmatmul.bf16.vlgmr.msra.gmra.mxu0 %v5080_v9  ;;  %v3737_v33 = vor.u32 %v4756_v27, %v3736_v24  ;;  %v3592_v35 = vld [vmem:[#allocation2 + $0x440] sm:$0xf]  ;;  %v4720_v36 = vld [vmem:[#allocation2 + $0x44c] sm:$0xf0]  ;;  %v3194_v55 = vld [vmem:[#allocation2 + $0x130] sm:$0xf0] }
  0x38   :  { %1282 = vmatpush.bf16.msrb.mxu0 %v3641_v0  ;;  %1295 = vmatpush.bf16.msrb.mxu1 %v3769_v1  ;;  %v3720_v37 = vld [vmem:[#allocation2 + $0x540] sm:$0xf]  ;;  %v4752_v39 = vld [vmem:[#allocation2 + $0x54c] sm:$0xf0]  ;;  %v3593_v44 = vor.u32 %v4720_v36, %v3592_v35  ;;  %v4582_v63 = vld [vmem:[#allocation2 + $0x4] sm:$0xf]  ;;  %v3197_v0 = vor.u32 %v4618_v54, %v3194_v55 }
  0x39   :  { %1308 = vmatpush.bf16.msrb.mxu2 %v3133_v5  ;;  %v3721_v45 = vor.u32 %v4752_v39, %v3720_v37  ;;  %v3576_v47 = vld [vmem:[#allocation2 + $0x420] sm:$0xf]  ;;  %v4716_v48 = vld [vmem:[#allocation2 + $0x42c] sm:$0xf0]  ;;  %v3050_v1 = vld [vmem:[#allocation2 + $0x10] sm:$0xf0] }
  0x3a   :  { %1321 = vmatpush.bf16.msrb.mxu3 %v3261_v11  ;;  %v3704_v49 = vld [vmem:[#allocation2 + $0x520] sm:$0xf]  ;;  %v4748_v51 = vld [vmem:[#allocation2 + $0x52c] sm:$0xf0]  ;;  %v3577_v56 = vor.u32 %v4716_v48, %v3576_v47  ;;  %v4614_v2 = vld [vmem:[#allocation2 + $0x104] sm:$0xf]  ;;  %v3053_v14 = vor.u32 %v4582_v63, %v3050_v1 }
  0x3b   :  { %v3560_v57 = vld [vmem:[#allocation2 + $0x400] sm:$0xf]  ;;  %v4712_v58 = vld [vmem:[#allocation2 + $0x40c] sm:$0xf0]  ;;  %v3705_v59 = vor.u32 %v4748_v51, %v3704_v49  ;;  %v3178_v3 = vld [vmem:[#allocation2 + $0x110] sm:$0xf0] }
  0x3c   :  { %1283 = vmatpush.bf16.msrb.mxu0 %v3625_v18  ;;  %1296 = vmatpush.bf16.msrb.mxu1 %v3753_v20  ;;  %v3688_v61 = vld [vmem:[#allocation2 + $0x500] sm:$0xf]  ;;  %v4744_v62 = vld [vmem:[#allocation2 + $0x50c] sm:$0xf0]  ;;  %v4674_v4 = vld [vmem:[#allocation2 + $0x2e4] sm:$0xf]  ;;  %v3561_v7 = vor.u32 %v4712_v58, %v3560_v57  ;;  %v3181_v19 = vor.u32 %v4614_v2, %v3178_v3 }
  0x3d   :  { %1309 = vmatpush.bf16.msrb.mxu2 %v3117_v21  ;;  %v3418_v5 = vld [vmem:[#allocation2 + $0x2f0] sm:$0xf0]  ;;  %v4706_v6 = vld [vmem:[#allocation2 + $0x3e4] sm:$0xf]  ;;  %v3689_v13 = vor.u32 %v4744_v62, %v3688_v61  ;;  %v59_v21 = vld [vmem:[%s5243_s0 + $0x28] sm:$0xff] }
  0x3e   :  { %1322 = vmatpush.bf16.msrb.mxu3 %v3245_v26  ;;  %v3546_v10 = vld [vmem:[#allocation2 + $0x3f0] sm:$0xf0]  ;;  %v4738_v11 = vld [vmem:[#allocation2 + $0x4e4] sm:$0xf]  ;;  %v3421_v20 = vor.u32 %v4674_v4, %v3418_v5  ;;  %v5104_v35 = vpack.c.bf16 %v59_v21, %v59_v21 }
  0x3f   :  { %v3674_v12 = vld [vmem:[#allocation2 + $0x4f0] sm:$0xf0]  ;;  %v4770_v16 = vld [vmem:[#allocation2 + $0x5e4] sm:$0xf]  ;;  %v3549_v22 = vor.u32 %v4706_v6, %v3546_v10 }
  0x40   :  { %1284 = vmatpush.bf16.msrb.mxu0 %v3609_v32  ;;  %1297 = vmatpush.bf16.msrb.mxu1 %v3737_v33  ;;  %v3802_v17 = vld [vmem:[#allocation2 + $0x5f0] sm:$0xf0]  ;;  %v58_v18 = vld [vmem:[%s5243_s0 + $0x20] sm:$0xff]  ;;  %v3677_v23 = vor.u32 %v4738_v11, %v3674_v12 }
  0x41   :  { %1310 = vmatpush.bf16.msrb.mxu2 %v3101_v34  ;;  %v4670_v24 = vld [vmem:[#allocation2 + $0x2c4] sm:$0xf]  ;;  %v3402_v26 = vld [vmem:[#allocation2 + $0x2d0] sm:$0xf0]  ;;  %v3805_v28 = vor.u32 %v4770_v16, %v3802_v17  ;;  %v5102_v32 = vpack.c.bf16 %v58_v18, %v58_v18 }
  0x42   :  { %1323 = vmatpush.bf16.msrb.mxu3 %v3229_v38  ;;  %v4702_v27 = vld [vmem:[#allocation2 + $0x3c4] sm:$0xf]  ;;  %v3530_v29 = vld [vmem:[#allocation2 + $0x3d0] sm:$0xf0]  ;;  %v3405_v36 = vor.u32 %v4670_v24, %v3402_v26 }
  0x43   :  { %v4734_v30 = vld [vmem:[#allocation2 + $0x4c4] sm:$0xf]  ;;  %v3658_v31 = vld [vmem:[#allocation2 + $0x4d0] sm:$0xf0]  ;;  %v3533_v37 = vor.u32 %v4702_v27, %v3530_v29 }
  0x44   :  { %1285 = vmatpush.bf16.msrb.mxu0 %v3593_v44  ;;  %1298 = vmatpush.bf16.msrb.mxu1 %v3721_v45  ;;  %v4766_v33 = vld [vmem:[#allocation2 + $0x5c4] sm:$0xf]  ;;  %v3786_v34 = vld [vmem:[#allocation2 + $0x5d0] sm:$0xf0]  ;;  %v3661_v38 = vor.u32 %v4734_v30, %v3658_v31 }
  0x45   :  { %1311 = vmatpush.bf16.msrb.mxu2 %v3085_v46  ;;  %v4666_v39 = vld [vmem:[#allocation2 + $0x2a4] sm:$0xf]  ;;  %v3386_v40 = vld [vmem:[#allocation2 + $0x2b0] sm:$0xf0]  ;;  %v3789_v42 = vor.u32 %v4766_v33, %v3786_v34 }
  0x46   :  { %1324 = vmatpush.bf16.msrb.mxu3 %v3213_v50  ;;  %v4698_v41 = vld [vmem:[#allocation2 + $0x3a4] sm:$0xf]  ;;  %v3514_v43 = vld [vmem:[#allocation2 + $0x3b0] sm:$0xf0]  ;;  %v3389_v48 = vor.u32 %v4666_v39, %v3386_v40 }
  0x47   :  { %v4730_v44 = vld [vmem:[#allocation2 + $0x4a4] sm:$0xf]  ;;  %v3642_v45 = vld [vmem:[#allocation2 + $0x4b0] sm:$0xf0]  ;;  %v3517_v49 = vor.u32 %v4698_v41, %v3514_v43 }
  0x48   :  { %1286 = vmatpush.bf16.msrb.mxu0 %v3577_v56  ;;  %1299 = vmatpush.bf16.msrb.mxu1 %v3705_v59  ;;  %v4762_v46 = vld [vmem:[#allocation2 + $0x5a4] sm:$0xf]  ;;  %v3770_v47 = vld [vmem:[#allocation2 + $0x5b0] sm:$0xf0]  ;;  %v3645_v50 = vor.u32 %v4730_v44, %v3642_v45 }
  0x49   :  { %1312 = vmatpush.bf16.msrb.mxu2 %v3069_v60  ;;  %v4662_v51 = vld [vmem:[#allocation2 + $0x284] sm:$0xf]  ;;  %v3370_v52 = vld [vmem:[#allocation2 + $0x290] sm:$0xf0]  ;;  %v3773_v54 = vor.u32 %v4762_v46, %v3770_v47 }
  0x4a   :  { %1325 = vmatpush.bf16.msrb.mxu3 %v3197_v0  ;;  %v4694_v53 = vld [vmem:[#allocation2 + $0x384] sm:$0xf]  ;;  %v3498_v55 = vld [vmem:[#allocation2 + $0x390] sm:$0xf0]  ;;  %v3373_v60 = vor.u32 %v4662_v51, %v3370_v52  ;;  %v4613_v51 = vld [vmem:[#allocation2 + $0xf4] sm:$0xf0] }
  0x4b   :  { %v4726_v56 = vld [vmem:[#allocation2 + $0x484] sm:$0xf]  ;;  %v3626_v57 = vld [vmem:[#allocation2 + $0x490] sm:$0xf0]  ;;  %v3501_v61 = vor.u32 %v4694_v53, %v3498_v55  ;;  %v3296_v52 = vld [vmem:[#allocation2 + $0x1e8] sm:$0xf] }
  0x4c   :  { %1287 = vmatpush.bf16.msrb.mxu0 %v3561_v7  ;;  %1300 = vmatpush.bf16.msrb.mxu1 %v3689_v13  ;;  %v4758_v58 = vld [vmem:[#allocation2 + $0x584] sm:$0xf]  ;;  %v3754_v59 = vld [vmem:[#allocation2 + $0x590] sm:$0xf0]  ;;  %v3629_v62 = vor.u32 %v4726_v56, %v3626_v57  ;;  %v3424_v55 = vld [vmem:[#allocation2 + $0x2e8] sm:$0xf] }
  0x4d   :  { %1313 = vmatpush.bf16.msrb.mxu2 %v3053_v14  ;;  %v4658_v63 = vld [vmem:[#allocation2 + $0x264] sm:$0xf]  ;;  %v3354_v0 = vld [vmem:[#allocation2 + $0x270] sm:$0xf0]  ;;  %v3757_v2 = vor.u32 %v4758_v58, %v3754_v59  ;;  %v4677_v56 = vld [vmem:[#allocation2 + $0x2f4] sm:$0xf0] }
  0x4e   :  { %1326 = vmatpush.bf16.msrb.mxu3 %v3181_v19  ;;  %v4690_v1 = vld [vmem:[#allocation2 + $0x364] sm:$0xf]  ;;  %v3482_v3 = vld [vmem:[#allocation2 + $0x370] sm:$0xf0]  ;;  %v3357_v10 = vor.u32 %v4658_v63, %v3354_v0  ;;  %v3552_v59 = vld [vmem:[#allocation2 + $0x3e8] sm:$0xf]  ;;  %v3425_v0 = vor.u32 %v4677_v56, %v3424_v55 }
  0x4f   :  { %1288 = vmatmul.bf16.vlgmr.msrb.gmra.mxu0 %v5102_v32  ;;  %1301 = vmatmul.bf16.vlgmr.msrb.gmra.mxu1 %v5104_v35  ;;  %v4722_v4 = vld [vmem:[#allocation2 + $0x464] sm:$0xf]  ;;  %v3610_v5 = vld [vmem:[#allocation2 + $0x470] sm:$0xf0]  ;;  %v3485_v11 = vor.u32 %v4690_v1, %v3482_v3  ;;  %v3152_v1 = vld [vmem:[#allocation2 + $0xc8] sm:$0xf] }
  0x50   :  { %1332 = vmatpush.bf16.msra.mxu0 %v3421_v20  ;;  %1345 = vmatpush.bf16.msra.mxu1 %v3549_v22  ;;  %v4754_v6 = vld [vmem:[#allocation2 + $0x564] sm:$0xf]  ;;  %v3738_v7 = vld [vmem:[#allocation2 + $0x570] sm:$0xf0]  ;;  %v3613_v12 = vor.u32 %v4722_v4, %v3610_v5  ;;  %v3280_v3 = vld [vmem:[#allocation2 + $0x1c8] sm:$0xf] }
  0x51   :  { %1358 = vmatpush.bf16.msra.mxu2 %v3677_v23  ;;  %1327 = vmatmul.bf16.vlgmr.msrb.gmra.mxu3 %v5093_v25  ;;  %v4654_v13 = vld [vmem:[#allocation2 + $0x244] sm:$0xf]  ;;  %v3338_v14 = vld [vmem:[#allocation2 + $0x250] sm:$0xf0]  ;;  %v3741_v17 = vor.u32 %v4754_v6, %v3738_v7  ;;  %v4641_v5 = vld [vmem:[#allocation2 + $0x1d4] sm:$0xf0] }
  0x52   :  { %1371 = vmatpush.bf16.msra.mxu3 %v3805_v28  ;;  %1314 = vmatmul.bf16.vlgmr.msrb.gmra.mxu2 %v5080_v9  ;;  %v4686_v16 = vld [vmem:[#allocation2 + $0x344] sm:$0xf]  ;;  %v3466_v18 = vld [vmem:[#allocation2 + $0x350] sm:$0xf0]  ;;  %v3341_v23 = vor.u32 %v4654_v13, %v3338_v14  ;;  %v3408_v6 = vld [vmem:[#allocation2 + $0x2c8] sm:$0xf]  ;;  %v3281_v13 = vor.u32 %v4641_v5, %v3280_v3 }
  0x53   :  { %v4718_v19 = vld [vmem:[#allocation2 + $0x444] sm:$0xf]  ;;  %v3594_v20 = vld [vmem:[#allocation2 + $0x450] sm:$0xf0]  ;;  %v3469_v24 = vor.u32 %v4686_v16, %v3466_v18  ;;  %v4673_v7 = vld [vmem:[#allocation2 + $0x2d4] sm:$0xf0] }
  0x54   :  { %1333 = vmatpush.bf16.msra.mxu0 %v3405_v36  ;;  %1346 = vmatpush.bf16.msra.mxu1 %v3533_v37  ;;  %v4750_v21 = vld [vmem:[#allocation2 + $0x544] sm:$0xf]  ;;  %v3722_v22 = vld [vmem:[#allocation2 + $0x550] sm:$0xf0]  ;;  %v3597_v26 = vor.u32 %v4718_v19, %v3594_v20  ;;  %v3409_v14 = vor.u32 %v4673_v7, %v3408_v6  ;;  %v3136_v16 = vld [vmem:[#allocation2 + $0xa8] sm:$0xf] }
  0x55   :  { %1359 = vmatpush.bf16.msra.mxu2 %v3661_v38  ;;  %v4650_v27 = vld [vmem:[#allocation2 + $0x224] sm:$0xf]  ;;  %v3322_v28 = vld [vmem:[#allocation2 + $0x230] sm:$0xf0]  ;;  %v3725_v30 = vor.u32 %v4750_v21, %v3722_v22  ;;  %v3264_v18 = vld [vmem:[#allocation2 + $0x1a8] sm:$0xf] }
  0x56   :  { %1372 = vmatpush.bf16.msra.mxu3 %v3789_v42  ;;  %v4682_v29 = vld [vmem:[#allocation2 + $0x324] sm:$0xf]  ;;  %v3450_v31 = vld [vmem:[#allocation2 + $0x330] sm:$0xf0]  ;;  %v3325_v38 = vor.u32 %v4650_v27, %v3322_v28  ;;  %v4637_v20 = vld [vmem:[#allocation2 + $0x1b4] sm:$0xf0] }
  0x57   :  { %v4714_v33 = vld [vmem:[#allocation2 + $0x424] sm:$0xf]  ;;  %v3578_v34 = vld [vmem:[#allocation2 + $0x430] sm:$0xf0]  ;;  %v3453_v41 = vor.u32 %v4682_v29, %v3450_v31  ;;  %v3392_v21 = vld [vmem:[#allocation2 + $0x2a8] sm:$0xf]  ;;  %v3265_v27 = vor.u32 %v4637_v20, %v3264_v18 }
  0x58   :  { %1334 = vmatpush.bf16.msra.mxu0 %v3389_v48  ;;  %1347 = vmatpush.bf16.msra.mxu1 %v3517_v49  ;;  %v4746_v36 = vld [vmem:[#allocation2 + $0x524] sm:$0xf]  ;;  %v3706_v37 = vld [vmem:[#allocation2 + $0x530] sm:$0xf0]  ;;  %v3581_v42 = vor.u32 %v4714_v33, %v3578_v34  ;;  %v4669_v22 = vld [vmem:[#allocation2 + $0x2b4] sm:$0xf0] }
  0x59   :  { %1360 = vmatpush.bf16.msra.mxu2 %v3645_v50  ;;  %v4646_v39 = vld [vmem:[#allocation2 + $0x204] sm:$0xf]  ;;  %v3306_v40 = vld [vmem:[#allocation2 + $0x210] sm:$0xf0]  ;;  %v3709_v46 = vor.u32 %v4746_v36, %v3706_v37  ;;  %v3168_v50 = vld [vmem:[#allocation2 + $0xe8] sm:$0xf]  ;;  %v3393_v28 = vor.u32 %v4669_v22, %v3392_v21 }
  0x5a   :  { %1373 = vmatpush.bf16.msra.mxu3 %v3773_v54  ;;  %v4678_v43 = vld [vmem:[#allocation2 + $0x304] sm:$0xf]  ;;  %v3434_v44 = vld [vmem:[#allocation2 + $0x310] sm:$0xf0]  ;;  %v3309_v53 = vor.u32 %v4646_v39, %v3306_v40  ;;  %v4645_v54 = vld [vmem:[#allocation2 + $0x1f4] sm:$0xf0] }
  0x5b   :  { %v4710_v45 = vld [vmem:[#allocation2 + $0x404] sm:$0xf]  ;;  %v3562_v47 = vld [vmem:[#allocation2 + $0x410] sm:$0xf0]  ;;  %v3437_v57 = vor.u32 %v4678_v43, %v3434_v44  ;;  %v3297_v63 = vor.u32 %v4645_v54, %v3296_v52  ;;  %v3120_v29 = vld [vmem:[#allocation2 + $0x88] sm:$0xf] }
  0x5c   :  { %1335 = vmatpush.bf16.msra.mxu0 %v3373_v60  ;;  %1348 = vmatpush.bf16.msra.mxu1 %v3501_v61  ;;  %v4742_v48 = vld [vmem:[#allocation2 + $0x504] sm:$0xf]  ;;  %v3690_v49 = vld [vmem:[#allocation2 + $0x510] sm:$0xf0]  ;;  %v3565_v58 = vor.u32 %v4710_v45, %v3562_v47  ;;  %v4709_v60 = vld [vmem:[#allocation2 + $0x3f4] sm:$0xf0] }
  0x5d   :  { %1361 = vmatpush.bf16.msra.mxu2 %v3629_v62  ;;  %v3693_v61 = vor.u32 %v4742_v48, %v3690_v49  ;;  %v3169_v62 = vor.u32 %v4613_v51, %v3168_v50  ;;  %v3553_v4 = vor.u32 %v4709_v60, %v3552_v59  ;;  %v3248_v31 = vld [vmem:[#allocation2 + $0x188] sm:$0xf]  ;;  %v4633_v34 = vld [vmem:[#allocation2 + $0x194] sm:$0xf0] }
  0x5e   :  { %1374 = vmatpush.bf16.msra.mxu3 %v3757_v2  ;;  %v4609_v2 = vld [vmem:[#allocation2 + $0xd4] sm:$0xf0]  ;;  %v3376_v36 = vld [vmem:[#allocation2 + $0x288] sm:$0xf] }
  0x5f   :  { %v4665_v37 = vld [vmem:[#allocation2 + $0x294] sm:$0xf0]  ;;  %v3104_v43 = vld [vmem:[#allocation2 + $0x68] sm:$0xf] }
  0x60   :  { %1336 = vmatpush.bf16.msra.mxu0 %v3357_v10  ;;  %1349 = vmatpush.bf16.msra.mxu1 %v3485_v11  ;;  %v3536_v10 = vld [vmem:[#allocation2 + $0x3c8] sm:$0xf]  ;;  %v4705_v11 = vld [vmem:[#allocation2 + $0x3d4] sm:$0xf0] }
  0x61   :  { %1362 = vmatpush.bf16.msra.mxu2 %v3613_v12  ;;  %v3153_v12 = vor.u32 %v4609_v2, %v3152_v1  ;;  %v3537_v19 = vor.u32 %v4705_v11, %v3536_v10  ;;  %v4697_v39 = vld [vmem:[#allocation2 + $0x394] sm:$0xf0]  ;;  %v3232_v45 = vld [vmem:[#allocation2 + $0x168] sm:$0xf] }
  0x62   :  { %1375 = vmatpush.bf16.msra.mxu3 %v3741_v17  ;;  %v4605_v17 = vld [vmem:[#allocation2 + $0xb4] sm:$0xf0]  ;;  %v3360_v48 = vld [vmem:[#allocation2 + $0x268] sm:$0xf] }
  0x63   :  { %v4597_v44 = vld [vmem:[#allocation2 + $0x74] sm:$0xf0]  ;;  %v3488_v50 = vld [vmem:[#allocation2 + $0x368] sm:$0xf] }
  0x64   :  { %1337 = vmatpush.bf16.msra.mxu0 %v3341_v23  ;;  %1350 = vmatpush.bf16.msra.mxu1 %v3469_v24  ;;  %v3520_v23 = vld [vmem:[#allocation2 + $0x3a8] sm:$0xf]  ;;  %v4701_v24 = vld [vmem:[#allocation2 + $0x3b4] sm:$0xf0]  ;;  %v3105_v52 = vor.u32 %v4597_v44, %v3104_v43 }
  0x65   :  { %1363 = vmatpush.bf16.msra.mxu2 %v3597_v26  ;;  %v3137_v26 = vor.u32 %v4605_v17, %v3136_v16  ;;  %v3521_v33 = vor.u32 %v4701_v24, %v3520_v23  ;;  %v4629_v47 = vld [vmem:[#allocation2 + $0x174] sm:$0xf0]  ;;  %v3088_v55 = vld [vmem:[#allocation2 + $0x48] sm:$0xf] }
  0x66   :  { %1376 = vmatpush.bf16.msra.mxu3 %v3725_v30  ;;  %v4601_v30 = vld [vmem:[#allocation2 + $0x94] sm:$0xf0]  ;;  %v3344_v60 = vld [vmem:[#allocation2 + $0x248] sm:$0xf] }
  0x67   :  { %v3121_v40 = vor.u32 %v4601_v30, %v3120_v29  ;;  %v4661_v49 = vld [vmem:[#allocation2 + $0x274] sm:$0xf0]  ;;  %v3072_v3 = vld [vmem:[#allocation2 + $0x28] sm:$0xf] }
  0x68   :  { %1338 = vmatpush.bf16.msra.mxu0 %v3325_v38  ;;  %1351 = vmatpush.bf16.msra.mxu1 %v3453_v41  ;;  %v3504_v38 = vld [vmem:[#allocation2 + $0x388] sm:$0xf]  ;;  %v3249_v41 = vor.u32 %v4633_v34, %v3248_v31  ;;  %v4693_v51 = vld [vmem:[#allocation2 + $0x374] sm:$0xf0]  ;;  %v3361_v54 = vor.u32 %v4661_v49, %v3360_v48  ;;  %v4611_v34 = vld [vmem:[#allocation2 + $0xec] sm:$0xf] }
  0x69   :  { %1364 = vmatpush.bf16.msra.mxu2 %v3581_v42  ;;  %v3377_v42 = vor.u32 %v4665_v37, %v3376_v36  ;;  %v4593_v56 = vld [vmem:[#allocation2 + $0x54] sm:$0xf0]  ;;  %v3200_v5 = vld [vmem:[#allocation2 + $0x128] sm:$0xf]  ;;  %v3170_v36 = vld [vmem:[#allocation2 + $0xf8] sm:$0xf0] }
  0x6a   :  { %1377 = vmatpush.bf16.msra.mxu3 %v3709_v46  ;;  %v3505_v46 = vor.u32 %v4697_v39, %v3504_v38  ;;  %v4625_v59 = vld [vmem:[#allocation2 + $0x154] sm:$0xf0]  ;;  %v3328_v10 = vld [vmem:[#allocation2 + $0x228] sm:$0xf]  ;;  %v4643_v39 = vld [vmem:[#allocation2 + $0x1ec] sm:$0xf]  ;;  %v3173_v44 = vor.u32 %v4611_v34, %v3170_v36 }
  0x6b   :  { %v4621_v7 = vld [vmem:[#allocation2 + $0x134] sm:$0xf0]  ;;  %v3056_v16 = vld [vmem:[#allocation2 + $0x8] sm:$0xf] }
  0x6c   :  { %1339 = vmatpush.bf16.msra.mxu0 %v3309_v53  ;;  %1352 = vmatpush.bf16.msra.mxu1 %v3437_v57  ;;  %v3233_v53 = vor.u32 %v4629_v47, %v3232_v45  ;;  %v3216_v57 = vld [vmem:[#allocation2 + $0x148] sm:$0xf]  ;;  %v4653_v11 = vld [vmem:[#allocation2 + $0x234] sm:$0xf0]  ;;  %v3201_v18 = vor.u32 %v4621_v7, %v3200_v5 }
  0x6d   :  { %1365 = vmatpush.bf16.msra.mxu2 %v3565_v58  ;;  %v3489_v58 = vor.u32 %v4693_v51, %v3488_v50  ;;  %v3217_v1 = vor.u32 %v4625_v59, %v3216_v57  ;;  %v4585_v17 = vld [vmem:[#allocation2 + $0x14] sm:$0xf0]  ;;  %v3184_v20 = vld [vmem:[#allocation2 + $0x108] sm:$0xf]  ;;  %v4607_v50 = vld [vmem:[#allocation2 + $0xcc] sm:$0xf] }
  0x6e   :  { %1378 = vmatpush.bf16.msra.mxu3 %v3693_v61  ;;  %v4657_v61 = vld [vmem:[#allocation2 + $0x254] sm:$0xf0]  ;;  %v3312_v22 = vld [vmem:[#allocation2 + $0x208] sm:$0xf]  ;;  %v3057_v31 = vor.u32 %v4585_v17, %v3056_v16  ;;  %v3154_v51 = vld [vmem:[#allocation2 + $0xd8] sm:$0xf0] }
  0x6f   :  { %1340 = vmatmul.bf16.vlgmr.msra.gmra.mxu0 %v5078_v8  ;;  %1353 = vmatmul.bf16.vlgmr.msra.gmra.mxu1 %v5085_v15  ;;  %v3345_v2 = vor.u32 %v4657_v61, %v3344_v60  ;;  %v4617_v21 = vld [vmem:[#allocation2 + $0x114] sm:$0xf0]  ;;  %v3808_v30 = vld [vmem:[#allocation2 + $0x5e8] sm:$0xf]  ;;  %v3250_v16 = vld [vmem:[#allocation2 + $0x198] sm:$0xf0] }
  0x70   :  { %1384 = vmatpush.bf16.msrb.mxu0 %v3169_v62  ;;  %1397 = vmatpush.bf16.msrb.mxu1 %v3297_v63  ;;  %v3472_v62 = vld [vmem:[#allocation2 + $0x348] sm:$0xf]  ;;  %v4689_v63 = vld [vmem:[#allocation2 + $0x354] sm:$0xf0]  ;;  %v3185_v37 = vor.u32 %v4617_v21, %v3184_v20 }
  0x71   :  { %1410 = vmatpush.bf16.msrb.mxu2 %v3425_v0  ;;  %1379 = vmatmul.bf16.vlgmr.msra.gmra.mxu3 %v5104_v35  ;;  %v3089_v0 = vor.u32 %v4593_v56, %v3088_v55  ;;  %v3473_v6 = vor.u32 %v4689_v63, %v3472_v62  ;;  %v4649_v24 = vld [vmem:[#allocation2 + $0x214] sm:$0xf0]  ;;  %v3664_v45 = vld [vmem:[#allocation2 + $0x4c8] sm:$0xf]  ;;  %v3157_v56 = vor.u32 %v4607_v50, %v3154_v51  ;;  %v4603_v62 = vld [vmem:[#allocation2 + $0xac] sm:$0xf] }
  0x72   :  { %1423 = vmatpush.bf16.msrb.mxu3 %v3553_v4  ;;  %1366 = vmatmul.bf16.vlgmr.msra.gmra.mxu2 %v5102_v32  ;;  %v4589_v4 = vld [vmem:[#allocation2 + $0x34] sm:$0xf0]  ;;  %v3313_v38 = vor.u32 %v4649_v24, %v3312_v22  ;;  %v3792_v47 = vld [vmem:[#allocation2 + $0x5c8] sm:$0xf]  ;;  %v3138_v63 = vld [vmem:[#allocation2 + $0xb8] sm:$0xf0] }
  0x73   :  { %v4741_v29 = vld [vmem:[#allocation2 + $0x4f4] sm:$0xf0]  ;;  %v3648_v57 = vld [vmem:[#allocation2 + $0x4a8] sm:$0xf] }
  0x74   :  { %1385 = vmatpush.bf16.msrb.mxu0 %v3153_v12  ;;  %1398 = vmatpush.bf16.msrb.mxu1 %v3281_v13  ;;  %v3456_v12 = vld [vmem:[#allocation2 + $0x328] sm:$0xf]  ;;  %v4685_v13 = vld [vmem:[#allocation2 + $0x334] sm:$0xf0] }
  0x75   :  { %1411 = vmatpush.bf16.msrb.mxu2 %v3409_v14  ;;  %v3073_v14 = vor.u32 %v4589_v4, %v3072_v3  ;;  %v3457_v23 = vor.u32 %v4685_v13, %v3456_v12  ;;  %v4769_v49 = vld [vmem:[#allocation2 + $0x5d4] sm:$0xf0]  ;;  %v3776_v59 = vld [vmem:[#allocation2 + $0x5a8] sm:$0xf]  ;;  %v3141_v4 = vor.u32 %v4603_v62, %v3138_v63  ;;  %v4599_v12 = vld [vmem:[#allocation2 + $0x8c] sm:$0xf] }
  0x76   :  { %1424 = vmatpush.bf16.msrb.mxu3 %v3537_v19  ;;  %v3329_v19 = vor.u32 %v4653_v11, %v3328_v10  ;;  %v3793_v55 = vor.u32 %v4769_v49, %v3792_v47  ;;  %v4765_v61 = vld [vmem:[#allocation2 + $0x5b4] sm:$0xf0]  ;;  %v3632_v5 = vld [vmem:[#allocation2 + $0x488] sm:$0xf]  ;;  %v3122_v13 = vld [vmem:[#allocation2 + $0x98] sm:$0xf0] }
  0x77   :  { %v3777_v3 = vor.u32 %v4765_v61, %v3776_v59  ;;  %v3760_v7 = vld [vmem:[#allocation2 + $0x588] sm:$0xf]  ;;  %v4761_v11 = vld [vmem:[#allocation2 + $0x594] sm:$0xf0]  ;;  %v4583_v63 = vld [vmem:[#allocation2 + $0xc] sm:$0xf] }
  0x78   :  { %1386 = vmatpush.bf16.msrb.mxu0 %v3137_v26  ;;  %1399 = vmatpush.bf16.msrb.mxu1 %v3265_v27  ;;  %v3440_v26 = vld [vmem:[#allocation2 + $0x308] sm:$0xf]  ;;  %v4681_v27 = vld [vmem:[#allocation2 + $0x314] sm:$0xf0] }
  0x79   :  { %1412 = vmatpush.bf16.msrb.mxu2 %v3393_v28  ;;  %v3680_v28 = vld [vmem:[#allocation2 + $0x4e8] sm:$0xf]  ;;  %v4725_v21 = vld [vmem:[#allocation2 + $0x474] sm:$0xf0] }
  0x7a   :  { %1425 = vmatpush.bf16.msrb.mxu3 %v3521_v33  ;;  %v4773_v33 = vld [vmem:[#allocation2 + $0x5f4] sm:$0xf0]  ;;  %v3616_v20 = vld [vmem:[#allocation2 + $0x468] sm:$0xf] }
  0x7b   :  { %v3809_v43 = vor.u32 %v4773_v33, %v3808_v30  ;;  %v3744_v22 = vld [vmem:[#allocation2 + $0x568] sm:$0xf]  ;;  %v4757_v24 = vld [vmem:[#allocation2 + $0x574] sm:$0xf0]  ;;  %v3617_v30 = vor.u32 %v4725_v21, %v3616_v20 }
  0x7c   :  { %1387 = vmatpush.bf16.msrb.mxu0 %v3121_v40  ;;  %1400 = vmatpush.bf16.msrb.mxu1 %v3249_v41  ;;  %v3298_v40 = vld [vmem:[#allocation2 + $0x1f8] sm:$0xf0]  ;;  %v3441_v41 = vor.u32 %v4681_v27, %v3440_v26  ;;  %v4595_v26 = vld [vmem:[#allocation2 + $0x6c] sm:$0xf]  ;;  %v3600_v34 = vld [vmem:[#allocation2 + $0x448] sm:$0xf] }
  0x7d   :  { %1413 = vmatpush.bf16.msrb.mxu2 %v3377_v42  ;;  %v3681_v42 = vor.u32 %v4741_v29, %v3680_v28  ;;  %v3301_v48 = vor.u32 %v4643_v39, %v3298_v40  ;;  %v3106_v27 = vld [vmem:[#allocation2 + $0x78] sm:$0xf0]  ;;  %v4627_v28 = vld [vmem:[#allocation2 + $0x16c] sm:$0xf]  ;;  %v4721_v36 = vld [vmem:[#allocation2 + $0x454] sm:$0xf0] }
  0x7e   :  { %1426 = vmatpush.bf16.msrb.mxu3 %v3505_v46  ;;  %v4737_v46 = vld [vmem:[#allocation2 + $0x4d4] sm:$0xf0]  ;;  %v3234_v29 = vld [vmem:[#allocation2 + $0x178] sm:$0xf0]  ;;  %v3109_v33 = vor.u32 %v4595_v26, %v3106_v27  ;;  %v4591_v40 = vld [vmem:[#allocation2 + $0x4c] sm:$0xf] }
  0x7f   :  { %v4753_v39 = vld [vmem:[#allocation2 + $0x554] sm:$0xf0]  ;;  %v3584_v47 = vld [vmem:[#allocation2 + $0x428] sm:$0xf]  ;;  %v3538_v27 = vld [vmem:[#allocation2 + $0x3d8] sm:$0xf0] }
  0x80   :  { %1388 = vmatpush.bf16.msrb.mxu0 %v3105_v52  ;;  %1401 = vmatpush.bf16.msrb.mxu1 %v3233_v53  ;;  %v4639_v52 = vld [vmem:[#allocation2 + $0x1cc] sm:$0xf]  ;;  %v3282_v53 = vld [vmem:[#allocation2 + $0x1d8] sm:$0xf0]  ;;  %v3712_v49 = vld [vmem:[#allocation2 + $0x528] sm:$0xf] }
  0x81   :  { %1414 = vmatpush.bf16.msrb.mxu2 %v3361_v54  ;;  %v3665_v54 = vor.u32 %v4737_v46, %v3664_v45  ;;  %v3285_v60 = vor.u32 %v4639_v52, %v3282_v53  ;;  %v4749_v51 = vld [vmem:[#allocation2 + $0x534] sm:$0xf0]  ;;  %v4587_v52 = vld [vmem:[#allocation2 + $0x2c] sm:$0xf]  ;;  %v3074_v53 = vld [vmem:[#allocation2 + $0x38] sm:$0xf0] }
  0x82   :  { %1427 = vmatpush.bf16.msrb.mxu3 %v3489_v58  ;;  %v4733_v58 = vld [vmem:[#allocation2 + $0x4b4] sm:$0xf0]  ;;  %v3713_v59 = vor.u32 %v4749_v51, %v3712_v49  ;;  %v3696_v61 = vld [vmem:[#allocation2 + $0x508] sm:$0xf]  ;;  %v4663_v49 = vld [vmem:[#allocation2 + $0x28c] sm:$0xf] }
  0x83   :  { %v4745_v62 = vld [vmem:[#allocation2 + $0x514] sm:$0xf0]  ;;  %v4695_v51 = vld [vmem:[#allocation2 + $0x38c] sm:$0xf] }
  0x84   :  { %1389 = vmatpush.bf16.msrb.mxu0 %v3089_v0  ;;  %1402 = vmatpush.bf16.msrb.mxu1 %v3217_v1  ;;  %v4635_v0 = vld [vmem:[#allocation2 + $0x1ac] sm:$0xf]  ;;  %v3266_v1 = vld [vmem:[#allocation2 + $0x1b8] sm:$0xf0] }
  0x85   :  { %1415 = vmatpush.bf16.msrb.mxu2 %v3345_v2  ;;  %v3649_v2 = vor.u32 %v4733_v58, %v3648_v57  ;;  %v3269_v10 = vor.u32 %v4635_v0, %v3266_v1  ;;  %v3568_v57 = vld [vmem:[#allocation2 + $0x408] sm:$0xf]  ;;  %v4713_v58 = vld [vmem:[#allocation2 + $0x414] sm:$0xf0]  ;;  %v3058_v1 = vld [vmem:[#allocation2 + $0x18] sm:$0xf0] }
  0x86   :  { %1428 = vmatpush.bf16.msrb.mxu3 %v3473_v6  ;;  %v4729_v6 = vld [vmem:[#allocation2 + $0x494] sm:$0xf0] }
  0x87   :  { %v3633_v17 = vor.u32 %v4729_v6, %v3632_v5  ;;  %v3426_v5 = vld [vmem:[#allocation2 + $0x2f8] sm:$0xf0]  ;;  %v4707_v6 = vld [vmem:[#allocation2 + $0x3ec] sm:$0xf] }
  0x88   :  { %1390 = vmatpush.bf16.msrb.mxu0 %v3073_v14  ;;  %1403 = vmatpush.bf16.msrb.mxu1 %v3201_v18  ;;  %v4631_v14 = vld [vmem:[#allocation2 + $0x18c] sm:$0xf]  ;;  %v3761_v18 = vor.u32 %v4761_v11, %v3760_v7  ;;  %v3569_v7 = vor.u32 %v4713_v58, %v3568_v57 }
  0x89   :  { %1416 = vmatpush.bf16.msrb.mxu2 %v3329_v19  ;;  %v3125_v19 = vor.u32 %v4599_v12, %v3122_v13  ;;  %v4739_v11 = vld [vmem:[#allocation2 + $0x4ec] sm:$0xf]  ;;  %v3682_v12 = vld [vmem:[#allocation2 + $0x4f8] sm:$0xf0]  ;;  %v3697_v13 = vor.u32 %v4745_v62, %v3696_v61 }
  0x8a   :  { %1429 = vmatpush.bf16.msrb.mxu3 %v3457_v23  ;;  %v3253_v23 = vor.u32 %v4631_v14, %v3250_v16  ;;  %v3061_v14 = vor.u32 %v4583_v63, %v3058_v1  ;;  %v4771_v16 = vld [vmem:[#allocation2 + $0x5ec] sm:$0xf]  ;;  %v3685_v21 = vor.u32 %v4739_v11, %v3682_v12  ;;  %v3490_v63 = vld [vmem:[#allocation2 + $0x378] sm:$0xf0] }
  0x8b   :  { %v4691_v61 = vld [vmem:[#allocation2 + $0x36c] sm:$0xf]  ;;  %v3618_v1 = vld [vmem:[#allocation2 + $0x478] sm:$0xf0] }
  0x8c   :  { %1391 = vmatpush.bf16.msrb.mxu0 %v3057_v31  ;;  %1404 = vmatpush.bf16.msrb.mxu1 %v3185_v37  ;;  %v3745_v31 = vor.u32 %v4757_v24, %v3744_v22  ;;  %v3728_v37 = vld [vmem:[#allocation2 + $0x548] sm:$0xf]  ;;  %v4671_v22 = vld [vmem:[#allocation2 + $0x2cc] sm:$0xf]  ;;  %v3346_v11 = vld [vmem:[#allocation2 + $0x258] sm:$0xf0] }
  0x8d   :  { %1417 = vmatpush.bf16.msrb.mxu2 %v3313_v38  ;;  %v3237_v38 = vor.u32 %v4627_v28, %v3234_v29  ;;  %v3729_v45 = vor.u32 %v4753_v39, %v3728_v37  ;;  %v4703_v24 = vld [vmem:[#allocation2 + $0x3cc] sm:$0xf]  ;;  %v3666_v29 = vld [vmem:[#allocation2 + $0x4d8] sm:$0xf0] }
  0x8e   :  { %1430 = vmatpush.bf16.msrb.mxu3 %v3441_v41  ;;  %v3090_v41 = vld [vmem:[#allocation2 + $0x58] sm:$0xf0]  ;;  %v4735_v28 = vld [vmem:[#allocation2 + $0x4cc] sm:$0xf] }
  0x8f   :  { %1392 = vmatmul.bf16.vlgmr.msrb.gmra.mxu0 %v5080_v9  ;;  %1405 = vmatmul.bf16.vlgmr.msrb.gmra.mxu1 %v5093_v25  ;;  %v3093_v46 = vor.u32 %v4591_v40, %v3090_v41  ;;  %v4667_v37 = vld [vmem:[#allocation2 + $0x2ac] sm:$0xf]  ;;  %v3522_v41 = vld [vmem:[#allocation2 + $0x3b8] sm:$0xf0] }
  0x90   :  { %1436 = vmatpush.bf16.msra.mxu0 %v3681_v42  ;;  %1449 = vmatpush.bf16.msra.mxu1 %v3809_v43  ;;  %v4623_v42 = vld [vmem:[#allocation2 + $0x14c] sm:$0xf]  ;;  %v3218_v43 = vld [vmem:[#allocation2 + $0x158] sm:$0xf0] }
  0x91   :  { %1462 = vmatpush.bf16.msra.mxu2 %v3173_v44  ;;  %1431 = vmatmul.bf16.vlgmr.msrb.gmra.mxu3 %v5085_v15  ;;  %v3601_v44 = vor.u32 %v4721_v36, %v3600_v34  ;;  %v3221_v50 = vor.u32 %v4623_v42, %v3218_v43  ;;  %v3541_v34 = vor.u32 %v4703_v24, %v3538_v27  ;;  %v4699_v39 = vld [vmem:[#allocation2 + $0x3ac] sm:$0xf]  ;;  %v3650_v43 = vld [vmem:[#allocation2 + $0x4b8] sm:$0xf0] }
  0x92   :  { %1475 = vmatpush.bf16.msra.mxu3 %v3301_v48  ;;  %1418 = vmatmul.bf16.vlgmr.msrb.gmra.mxu2 %v5078_v8  ;;  %v4717_v48 = vld [vmem:[#allocation2 + $0x434] sm:$0xf0]  ;;  %v3669_v36 = vor.u32 %v4735_v28, %v3666_v29  ;;  %v4731_v42 = vld [vmem:[#allocation2 + $0x4ac] sm:$0xf]  ;;  %v3330_v27 = vld [vmem:[#allocation2 + $0x238] sm:$0xf0] }
  0x93   :  { %v4687_v12 = vld [vmem:[#allocation2 + $0x34c] sm:$0xf]  ;;  %v3458_v29 = vld [vmem:[#allocation2 + $0x338] sm:$0xf0] }
  0x94   :  { %1437 = vmatpush.bf16.msra.mxu0 %v3665_v54  ;;  %1450 = vmatpush.bf16.msra.mxu1 %v3793_v55  ;;  %v4619_v54 = vld [vmem:[#allocation2 + $0x12c] sm:$0xf]  ;;  %v3202_v55 = vld [vmem:[#allocation2 + $0x138] sm:$0xf0] }
  0x95   :  { %1463 = vmatpush.bf16.msra.mxu2 %v3157_v56  ;;  %v3585_v56 = vor.u32 %v4717_v48, %v3584_v47  ;;  %v3205_v0 = vor.u32 %v4619_v54, %v3202_v55  ;;  %v3525_v47 = vor.u32 %v4699_v39, %v3522_v41  ;;  %v3653_v48 = vor.u32 %v4731_v42, %v3650_v43  ;;  %v4727_v54 = vld [vmem:[#allocation2 + $0x48c] sm:$0xf]  ;;  %v3634_v55 = vld [vmem:[#allocation2 + $0x498] sm:$0xf0] }
  0x96   :  { %1476 = vmatpush.bf16.msra.mxu3 %v3285_v60  ;;  %v3077_v60 = vor.u32 %v4587_v52, %v3074_v53  ;;  %v3506_v53 = vld [vmem:[#allocation2 + $0x398] sm:$0xf0]  ;;  %v4683_v28 = vld [vmem:[#allocation2 + $0x32c] sm:$0xf] }
  0x97   :  { %v3509_v58 = vor.u32 %v4695_v51, %v3506_v53  ;;  %v4647_v41 = vld [vmem:[#allocation2 + $0x20c] sm:$0xf]  ;;  %v3461_v43 = vor.u32 %v4683_v28, %v3458_v29  ;;  %v3698_v53 = vld [vmem:[#allocation2 + $0x518] sm:$0xf0]  ;;  %v4795_v28 = vld [vmem:[#allocation4 + $0xa4] sm:$0xf0] }
  0x98   :  { %1438 = vmatpush.bf16.msra.mxu0 %v3649_v2  ;;  %1451 = vmatpush.bf16.msra.mxu1 %v3777_v3  ;;  %v4615_v2 = vld [vmem:[#allocation2 + $0x10c] sm:$0xf]  ;;  %v3186_v3 = vld [vmem:[#allocation2 + $0x118] sm:$0xf0]  ;;  %v4080_v29 = vld [vmem:[#allocation4 + $0x210] sm:$0xf] }
  0x99   :  { %1464 = vmatpush.bf16.msra.mxu2 %v3141_v4  ;;  %v4675_v4 = vld [vmem:[#allocation2 + $0x2ec] sm:$0xf] }
  0x9a   :  { %1477 = vmatpush.bf16.msra.mxu3 %v3269_v10  ;;  %v3554_v10 = vld [vmem:[#allocation2 + $0x3f8] sm:$0xf0]  ;;  %v4743_v51 = vld [vmem:[#allocation2 + $0x50c] sm:$0xf] }
  0x9b   :  { %v3557_v20 = vor.u32 %v4707_v6, %v3554_v10  ;;  %v3493_v6 = vor.u32 %v4691_v61, %v3490_v63  ;;  %v4655_v10 = vld [vmem:[#allocation2 + $0x24c] sm:$0xf] }
  0x9c   :  { %1439 = vmatpush.bf16.msra.mxu0 %v3633_v17  ;;  %1452 = vmatpush.bf16.msra.mxu1 %v3761_v18  ;;  %v3810_v17 = vld [vmem:[#allocation2 + $0x5f8] sm:$0xf0]  ;;  %v3189_v18 = vor.u32 %v4615_v2, %v3186_v3  ;;  %v4755_v2 = vld [vmem:[#allocation2 + $0x56c] sm:$0xf] }
  0x9d   :  { %1465 = vmatpush.bf16.msra.mxu2 %v3125_v19  ;;  %v3429_v19 = vor.u32 %v4675_v4, %v3426_v5  ;;  %v3813_v26 = vor.u32 %v4771_v16, %v3810_v17  ;;  %v3746_v3 = vld [vmem:[#allocation2 + $0x578] sm:$0xf0]  ;;  %v4719_v16 = vld [vmem:[#allocation2 + $0x44c] sm:$0xf] }
  0x9e   :  { %1478 = vmatpush.bf16.msra.mxu3 %v3253_v23  ;;  %v3410_v23 = vld [vmem:[#allocation2 + $0x2d8] sm:$0xf0] }
  0x9f   :  { %v3602_v17 = vld [vmem:[#allocation2 + $0x458] sm:$0xf0] }
  0xa0   :  { %1440 = vmatpush.bf16.msra.mxu0 %v3617_v30  ;;  %1453 = vmatpush.bf16.msra.mxu1 %v3745_v31  ;;  %v4767_v30 = vld [vmem:[#allocation2 + $0x5cc] sm:$0xf]  ;;  %v3794_v31 = vld [vmem:[#allocation2 + $0x5d8] sm:$0xf0] }
  0xa1   :  { %1466 = vmatpush.bf16.msra.mxu2 %v3109_v33  ;;  %v3413_v33 = vor.u32 %v4671_v22, %v3410_v23  ;;  %v3797_v40 = vor.u32 %v4767_v30, %v3794_v31  ;;  %v4651_v22 = vld [vmem:[#allocation2 + $0x22c] sm:$0xf] }
  0xa2   :  { %1479 = vmatpush.bf16.msra.mxu3 %v3237_v38  ;;  %v3394_v38 = vld [vmem:[#allocation2 + $0x2b8] sm:$0xf0]  ;;  %v4715_v31 = vld [vmem:[#allocation2 + $0x42c] sm:$0xf] }
  0xa4   :  { %1441 = vmatpush.bf16.msra.mxu0 %v3601_v44  ;;  %1454 = vmatpush.bf16.msra.mxu1 %v3729_v45  ;;  %v4763_v44 = vld [vmem:[#allocation2 + $0x5ac] sm:$0xf]  ;;  %v3778_v45 = vld [vmem:[#allocation2 + $0x5b8] sm:$0xf0] }
  0xa5   :  { %1467 = vmatpush.bf16.msra.mxu2 %v3093_v46  ;;  %v3397_v46 = vor.u32 %v4667_v37, %v3394_v38  ;;  %v3781_v52 = vor.u32 %v4763_v44, %v3778_v45  ;;  %v4747_v37 = vld [vmem:[#allocation2 + $0x52c] sm:$0xf]  ;;  %v3714_v38 = vld [vmem:[#allocation2 + $0x538] sm:$0xf0] }
  0xa6   :  { %1480 = vmatpush.bf16.msra.mxu3 %v3221_v50  ;;  %v3378_v50 = vld [vmem:[#allocation2 + $0x298] sm:$0xf0] }
  0xa7   :  { %v3381_v57 = vor.u32 %v4663_v49, %v3378_v50  ;;  %v3314_v45 = vld [vmem:[#allocation2 + $0x218] sm:$0xf0]  ;;  %v4711_v49 = vld [vmem:[#allocation2 + $0x40c] sm:$0xf] }
  0xa8   :  { %1442 = vmatpush.bf16.msra.mxu0 %v3585_v56  ;;  %1455 = vmatpush.bf16.msra.mxu1 %v3713_v59  ;;  %v4759_v56 = vld [vmem:[#allocation2 + $0x58c] sm:$0xf]  ;;  %v3570_v50 = vld [vmem:[#allocation2 + $0x418] sm:$0xf0] }
  0xa9   :  { %1468 = vmatpush.bf16.msra.mxu2 %v3077_v60  ;;  %v4659_v59 = vld [vmem:[#allocation2 + $0x26c] sm:$0xf]  ;;  %v3362_v60 = vld [vmem:[#allocation2 + $0x278] sm:$0xf0] }
  0xaa   :  { %1481 = vmatpush.bf16.msra.mxu3 %v3205_v0  ;;  %v4723_v0 = vld [vmem:[#allocation2 + $0x46c] sm:$0xf]  ;;  %v3365_v4 = vor.u32 %v4659_v59, %v3362_v60  ;;  %v3573_v59 = vor.u32 %v4711_v49, %v3570_v50  ;;  %v3701_v60 = vor.u32 %v4743_v51, %v3698_v53  ;;  %v3840_v49 = vld [vmem:[#allocation4 + $0x30] sm:$0xf]  ;;  %v4783_v50 = vld [vmem:[#allocation4 + $0x44] sm:$0xf0] }
  0xab   :  { %v4032_v51 = vld [vmem:[#allocation4 + $0x1b0] sm:$0xf]  ;;  %v4344_v53 = vld [vmem:[#allocation4 + $0x420] sm:$0xf] }
  0xac   :  { %1443 = vmatpush.bf16.msra.mxu0 %v3569_v7  ;;  %1456 = vmatpush.bf16.msra.mxu1 %v3697_v13  ;;  %v3621_v7 = vor.u32 %v4723_v0, %v3618_v1  ;;  %v3749_v13 = vor.u32 %v4755_v2, %v3746_v3  ;;  %v1250_v23 = vpop.f32.mrf.mxu1  ;;  %v3960_v1 = vld [vmem:[#allocation4 + $0x120] sm:$0xf]  ;;  %v4813_v2 = vld [vmem:[#allocation4 + $0x134] sm:$0xf0] }
  0xad   :  { %1469 = vmatpush.bf16.msra.mxu2 %v3061_v14  ;;  %v3474_v14 = vld [vmem:[#allocation2 + $0x358] sm:$0xf0] }
  0xae   :  { %1482 = vmatpush.bf16.msra.mxu3 %v3189_v18  ;;  %v4751_v18 = vld [vmem:[#allocation2 + $0x54c] sm:$0xf]  ;;  %v3477_v24 = vor.u32 %v4687_v12, %v3474_v14  ;;  %v4807_v12 = vld [vmem:[#allocation4 + $0x104] sm:$0xf0] }
  0xaf   :  { %1444 = vmatmul.bf16.vlgmr.msra.gmra.mxu0 %v5102_v32  ;;  %1457 = vmatmul.bf16.vlgmr.msra.gmra.mxu1 %v5104_v35  ;;  %v4855_v14 = vld [vmem:[#allocation4 + $0x284] sm:$0xf0] }
  0xb0   :  { %1488 = vmatpush.bf16.msrb.mxu0 %v3429_v19  ;;  %1501 = vmatpush.bf16.msrb.mxu1 %v3557_v20  ;;  %v3730_v19 = vld [vmem:[#allocation2 + $0x558] sm:$0xf0]  ;;  %v5125_v20 = vld [vmem:[%s5245_s2] sm:$0xf] }
  0xb1   :  { %1514 = vmatpush.bf16.msrb.mxu2 %v3685_v21  ;;  %1483 = vmatmul.bf16.vlgmr.msra.gmra.mxu3 %v5093_v25  ;;  %v3637_v25 = vor.u32 %v4727_v54, %v3634_v55  ;;  %v3349_v21 = vor.u32 %v4655_v10, %v3346_v11  ;;  %v3733_v30 = vor.u32 %v4751_v18, %v3730_v19  ;;  %v3984_v54 = vld [vmem:[#allocation4 + $0x150] sm:$0xf]  ;;  %v4819_v55 = vld [vmem:[#allocation4 + $0x164] sm:$0xf0]  ;;  %v3912_v19 = vld [vmem:[#allocation4 + $0xc0] sm:$0xf] }
  0xb2   :  { %1527 = vmatpush.bf16.msrb.mxu3 %v3813_v26  ;;  %1470 = vmatmul.bf16.vlgmr.msra.gmra.mxu2 %v5080_v9  ;;  %v3762_v9 = vld [vmem:[#allocation2 + $0x598] sm:$0xf0]  ;;  %v3605_v26 = vor.u32 %v4719_v16, %v3602_v17  ;;  %v3985_v61 = vor.u32 %v4819_v55, %v3984_v54  ;;  %v3936_v11 = vld [vmem:[#allocation4 + $0xf0] sm:$0xf]  ;;  %v4909_v54 = vld [vmem:[#allocation4 + $0x434] sm:$0xf0] }
  0xb3   :  { %v3765_v62 = vor.u32 %v4759_v56, %v3762_v9  ;;  %v3317_v56 = vor.u32 %v4647_v41, %v3314_v45  ;;  %v4176_v9 = vld [vmem:[#allocation4 + $0x2d0] sm:$0xf]  ;;  %v3937_v16 = vor.u32 %v4807_v12, %v3936_v11  ;;  %v4345_v55 = vor.u32 %v4909_v54, %v4344_v53  ;;  %v4810_v12 = vld [vmem:[#allocation4 + $0x124] sm:$0xf] }
  0xb4   :  { %1489 = vmatpush.bf16.msrb.mxu0 %v3413_v33  ;;  %1502 = vmatpush.bf16.msrb.mxu1 %v3541_v34  ;;  %v1237_v5 = vpop.f32.mrf.mxu0  ;;  %v3586_v33 = vld [vmem:[#allocation2 + $0x438] sm:$0xf0]  ;;  %v260_v34 = vperm.slane %v5125_v20, 0  ;;  %v1276_v39 = vpop.f32.mrf.mxu3 }
  0xb5   :  { %1515 = vmatpush.bf16.msrb.mxu2 %v3669_v36  ;;  %v3589_v44 = vor.u32 %v4715_v31, %v3586_v33 }
  0xb6   :  { %1528 = vmatpush.bf16.msrb.mxu3 %v3797_v40  ;;  %v3333_v40 = vor.u32 %v4651_v22, %v3330_v27  ;;  %v4104_v22 = vld [vmem:[#allocation4 + $0x240] sm:$0xf]  ;;  %v3888_v27 = vld [vmem:[#allocation4 + $0x90] sm:$0xf] }
  0xb7   :  { %v3889_v31 = vor.u32 %v4795_v28, %v3888_v27  ;;  %v4272_v27 = vld [vmem:[#allocation4 + $0x390] sm:$0xf]  ;;  %v4891_v28 = vld [vmem:[#allocation4 + $0x3a4] sm:$0xf0] }
  0xb8   :  { %1490 = vmatpush.bf16.msrb.mxu0 %v3397_v46  ;;  %1503 = vmatpush.bf16.msrb.mxu1 %v3525_v47  ;;  %v4679_v46 = vld [vmem:[#allocation2 + $0x30c] sm:$0xf]  ;;  %v3442_v47 = vld [vmem:[#allocation2 + $0x318] sm:$0xf0] }
  0xb9   :  { %1516 = vmatpush.bf16.msrb.mxu2 %v3653_v48  ;;  %v1263_v36 = vpop.f32.mrf.mxu2  ;;  %v3717_v48 = vor.u32 %v4747_v37, %v3714_v38  ;;  %v4789_v37 = vld [vmem:[#allocation4 + $0x74] sm:$0xf0]  ;;  %v4056_v38 = vld [vmem:[#allocation4 + $0x1e0] sm:$0xf] }
  0xba   :  { %1529 = vmatpush.bf16.msrb.mxu3 %v3781_v52  ;;  %v1238_v52 = vadd.f32 %v1237_v5, %v260_v34  ;;  %v4861_v5 = vld [vmem:[#allocation4 + $0x2b4] sm:$0xf0] }
  0xbc   :  { %1491 = vmatpush.bf16.msrb.mxu0 %v3381_v57  ;;  %1504 = vmatpush.bf16.msrb.mxu1 %v3509_v58  ;;  %v1239_v42 = vpop.f32.mrf.mxu0  ;;  %v4867_v57 = vld [vmem:[#allocation4 + $0x2e4] sm:$0xf0]  ;;  %v1252_v58 = vpop.f32.mrf.mxu1 }
  0xbd   :  { %1517 = vmatpush.bf16.msrb.mxu2 %v3637_v25  ;;  %v3445_v25 = vor.u32 %v4679_v46, %v3442_v47  ;;  %v4177_v0 = vor.u32 %v4867_v57, %v4176_v9  ;;  %v1278_v3 = vpop.f32.mrf.mxu3  ;;  %v3816_v9 = vld [vmem:[#allocation4] sm:$0xf]  ;;  %v4777_v57 = vld [vmem:[#allocation4 + $0x14] sm:$0xf0] }
  0xbe   :  { %1530 = vmatpush.bf16.msrb.mxu3 %v3765_v62  ;;  %v1251_v62 = vadd.f32 %v1250_v23, %v1238_v52  ;;  %v4831_v52 = vld [vmem:[#allocation4 + $0x1c4] sm:$0xf0] }
  0xbf   :  { %v4033_v58 = vor.u32 %v4831_v52, %v4032_v51  ;;  %v4224_v51 = vld [vmem:[#allocation4 + $0x330] sm:$0xf]  ;;  %v4879_v52 = vld [vmem:[#allocation4 + $0x344] sm:$0xf0] }
  0xc0   :  { %1492 = vmatpush.bf16.msrb.mxu0 %v3365_v4  ;;  %1505 = vmatpush.bf16.msrb.mxu1 %v3493_v6  ;;  %v4152_v4 = vld [vmem:[#allocation4 + $0x2a0] sm:$0xf]  ;;  %v3961_v6 = vor.u32 %v4813_v2, %v3960_v1  ;;  %v4864_v1 = vld [vmem:[#allocation4 + $0x2d4] sm:$0xf]  ;;  %v4178_v2 = vld [vmem:[#allocation4 + $0x2e8] sm:$0xf0]  ;;  %v4225_v53 = vor.u32 %v4879_v52, %v4224_v51 }
  0xc1   :  { %1518 = vmatpush.bf16.msrb.mxu2 %v3621_v7  ;;  %v1265_v63 = vpop.f32.mrf.mxu2  ;;  %v1264_v7 = vadd.f32 %v1263_v36, %v1251_v62  ;;  %v4153_v10 = vor.u32 %v4861_v5, %v4152_v4  ;;  %v3864_v36 = vld [vmem:[#allocation4 + $0x60] sm:$0xf]  ;;  %v3817_v5 = vor.u32 %v4777_v57, %v3816_v9  ;;  %v4181_v11 = vor.u32 %v4864_v1, %v4178_v2  ;;  %v3866_v9 = vld [vmem:[#allocation4 + $0x78] sm:$0xf0]  ;;  %v4834_v57 = vld [vmem:[#allocation4 + $0x1e4] sm:$0xf] }
  0xc2   :  { %1531 = vmatpush.bf16.msrb.mxu3 %v3749_v13  ;;  %v4128_v13 = vld [vmem:[#allocation4 + $0x270] sm:$0xf]  ;;  %v3865_v45 = vor.u32 %v4789_v37, %v3864_v36  ;;  %v4106_v37 = vld [vmem:[#allocation4 + $0x258] sm:$0xf0]  ;;  %v4370_v1 = vld [vmem:[#allocation4 + $0x468] sm:$0xf0] }
  0xc3   :  { %v1277_v17 = vadd.f32 %v1276_v39, %v1264_v7  ;;  %v4129_v18 = vor.u32 %v4855_v14, %v4128_v13  ;;  %v4837_v39 = vld [vmem:[#allocation4 + $0x1f4] sm:$0xf0]  ;;  %v4320_v63 = vld [vmem:[#allocation4 + $0x3f0] sm:$0xf]  ;;  %v3962_v13 = vld [vmem:[#allocation4 + $0x138] sm:$0xf0] }
  0xc4   :  { %1493 = vmatpush.bf16.msrb.mxu0 %v3349_v21  ;;  %1506 = vmatpush.bf16.msrb.mxu1 %v3477_v24  ;;  %v4801_v21 = vld [vmem:[#allocation4 + $0xd4] sm:$0xf0]  ;;  %v4858_v14 = vld [vmem:[#allocation4 + $0x2a4] sm:$0xf]  ;;  %v4298_v52 = vld [vmem:[#allocation4 + $0x3d8] sm:$0xf0] }
  0xc5   :  { %1519 = vmatpush.bf16.msrb.mxu2 %v3605_v26  ;;  %v3913_v24 = vor.u32 %v4801_v21, %v3912_v19  ;;  %v4894_v51 = vld [vmem:[#allocation4 + $0x3c4] sm:$0xf] }
  0xc6   :  { %1532 = vmatpush.bf16.msrb.mxu3 %v3733_v30 }
  0xc8   :  { %1494 = vmatpush.bf16.msrb.mxu0 %v3333_v40  ;;  %1507 = vmatpush.bf16.msrb.mxu1 %v3461_v43  ;;  %v4368_v43 = vld [vmem:[#allocation4 + $0x450] sm:$0xf] }
  0xc9   :  { %1520 = vmatpush.bf16.msrb.mxu2 %v3589_v44  ;;  %v4915_v44 = vld [vmem:[#allocation4 + $0x464] sm:$0xf0] }
  0xca   :  { %1533 = vmatpush.bf16.msrb.mxu3 %v3717_v48  ;;  %v4369_v47 = vor.u32 %v4915_v44, %v4368_v43  ;;  %v4057_v48 = vor.u32 %v4837_v39, %v4056_v38  ;;  %v4248_v38 = vld [vmem:[#allocation4 + $0x360] sm:$0xf]  ;;  %v4885_v39 = vld [vmem:[#allocation4 + $0x374] sm:$0xf0] }
  0xcc   :  { %1495 = vmatpush.bf16.msrb.mxu0 %v3317_v56  ;;  %1508 = vmatpush.bf16.msrb.mxu1 %v3445_v25  ;;  %v1289_v23 = vpop.f32.mrf.mxu0  ;;  %v3841_v56 = vor.u32 %v4783_v50, %v3840_v49  ;;  %v4008_v25 = vld [vmem:[#allocation4 + $0x180] sm:$0xf]  ;;  %v4082_v50 = vld [vmem:[#allocation4 + $0x228] sm:$0xf0] }
  0xcd   :  { %1521 = vmatpush.bf16.msrb.mxu2 %v3573_v59  ;;  %v1290_v26 = vadd.f32 %v1289_v23, %v1277_v17  ;;  %v4825_v59 = vld [vmem:[#allocation4 + $0x194] sm:$0xf0]  ;;  %v4296_v17 = vld [vmem:[#allocation4 + $0x3c0] sm:$0xf]  ;;  %v4804_v23 = vld [vmem:[#allocation4 + $0xf4] sm:$0xf] }
  0xce   :  { %1534 = vmatpush.bf16.msrb.mxu3 %v3701_v60  ;;  %v4816_v60 = vld [vmem:[#allocation4 + $0x154] sm:$0xf] }
  0xcf   :  { %1496 = vmatmul.bf16.vlgmr.msrb.gmra.mxu0 %v5078_v8  ;;  %1509 = vmatmul.bf16.vlgmr.msrb.gmra.mxu1 %v5085_v15  ;;  %v4849_v8 = vld [vmem:[#allocation4 + $0x254] sm:$0xf0]  ;;  %v1302_v15 = vpop.f32.mrf.mxu1 }
  0xd0   :  { %2718 = vmatpush.bf16.msra.mxu0 %v3985_v61  ;;  %2731 = vmatpush.bf16.msra.mxu1 %v4177_v0  ;;  %v1303_v30 = vadd.f32 %v1302_v15, %v1290_v26  ;;  %v3986_v61 = vld [vmem:[#allocation4 + $0x168] sm:$0xf0]  ;;  %v4903_v0 = vld [vmem:[#allocation4 + $0x404] sm:$0xf0]  ;;  %v4852_v26 = vld [vmem:[#allocation4 + $0x274] sm:$0xf] }
  0xd1   :  { %1522 = vmatmul.bf16.vlgmr.msrb.gmra.mxu2 %v5102_v32  ;;  %1535 = vmatmul.bf16.vlgmr.msrb.gmra.mxu3 %v5104_v35  ;;  %v4105_v32 = vor.u32 %v4849_v8, %v4104_v22  ;;  %v4843_v35 = vld [vmem:[#allocation4 + $0x224] sm:$0xf0]  ;;  %v4321_v4 = vor.u32 %v4903_v0, %v4320_v63  ;;  %v3989_v7 = vor.u32 %v4816_v60, %v3986_v61  ;;  %v4873_v60 = vld [vmem:[#allocation4 + $0x314] sm:$0xf0]  ;;  %v4912_v61 = vld [vmem:[#allocation4 + $0x454] sm:$0xf] }
  0xd2   :  { %v1540_v33 = vmax.f32 %v1303_v30, 0.0  ;;  %v4081_v34 = vor.u32 %v4843_v35, %v4080_v29  ;;  %2744 = vmatpush.bf16.msra.mxu2 %v4369_v47  ;;  %v3965_v22 = vor.u32 %v4810_v12, %v3962_v13  ;;  %v4273_v29 = vor.u32 %v4891_v28, %v4272_v27  ;;  %v4840_v47 = vld [vmem:[#allocation4 + $0x214] sm:$0xf]  ;;  %v4034_v12 = vld [vmem:[#allocation4 + $0x1c8] sm:$0xf0] }
  0xd3   :  { %v4560_v27 = vld [vmem:[#allocation4 + $0x5d0] sm:$0xf]  ;;  %v4963_v28 = vld [vmem:[#allocation4 + $0x5e4] sm:$0xf0] }
  0xd4   :  { %2719 = vmatpush.bf16.msra.mxu0 %v3961_v6  ;;  %2732 = vmatpush.bf16.msra.mxu1 %v4153_v10  ;;  %1544 = vst [vmem:[%s5248_s5] sm:$0xff] %v1540_v33  ;;  %v5137_v41 = vpop.f32.mrf.mxu3  ;;  %v1291_v42 = vpop.f32.mrf.mxu0  ;;  %v4009_v6 = vor.u32 %v4825_v59, %v4008_v25  ;;  %v261_v10 = vperm.slane %v5125_v20, 1  ;;  %v5140_v21 = vpack.c.bf16 %v1540_v33, %v1540_v33  ;;  %v3914_v33 = vld [vmem:[#allocation4 + $0xd8] sm:$0xf0]  ;;  %v4200_v59 = vld [vmem:[#allocation4 + $0x300] sm:$0xf] }
  0xd5   :  { %v5135_v40 = vpop.f32.mrf.mxu2  ;;  %v4201_v0 = vor.u32 %v4873_v60, %v4200_v59  ;;  %v4856_v59 = vld [vmem:[#allocation4 + $0x28c] sm:$0xf0]  ;;  %v4888_v60 = vld [vmem:[#allocation4 + $0x394] sm:$0xf] }
  0xd6   :  { %2745 = vmatpush.bf16.msra.mxu2 %v4345_v55  ;;  %v1316_v15 = vadd.f32 %v5135_v40, %v261_v10  ;;  %v4249_v40 = vor.u32 %v4885_v39, %v4248_v38  ;;  %v4786_v55 = vld [vmem:[#allocation4 + $0x64] sm:$0xf]  ;;  %v4828_v10 = vld [vmem:[#allocation4 + $0x1b4] sm:$0xf] }
  0xd7   :  { %v1304_v46 = vpop.f32.mrf.mxu1  ;;  %v3869_v2 = vor.u32 %v4786_v55, %v3866_v9  ;;  %v4951_v55 = vld [vmem:[#allocation4 + $0x584] sm:$0xf0]  ;;  %v3944_v9 = vld [vmem:[#allocation4 + $0xf8] sm:$0xf] }
  0xd8   :  { %2720 = vmatpush.bf16.msra.mxu0 %v3937_v16  ;;  %2733 = vmatpush.bf16.msra.mxu1 %v4129_v18  ;;  %v4154_v16 = vld [vmem:[#allocation4 + $0x2b8] sm:$0xf0]  ;;  %v4897_v18 = vld [vmem:[#allocation4 + $0x3d4] sm:$0xf0]  ;;  %v1329_v36 = vadd.f32 %v5137_v41, %v1316_v15  ;;  %v3890_v46 = vld [vmem:[#allocation4 + $0xa8] sm:$0xf0] }
  0xd9   :  { %v4297_v19 = vor.u32 %v4897_v18, %v4296_v17  ;;  %v4157_v8 = vor.u32 %v4858_v14, %v4154_v16  ;;  %v4906_v14 = vld [vmem:[#allocation4 + $0x424] sm:$0xf]  ;;  %v4346_v16 = vld [vmem:[#allocation4 + $0x438] sm:$0xf0] }
  0xda   :  { %2746 = vmatpush.bf16.msra.mxu2 %v4321_v4  ;;  %v4774_v18 = vld [vmem:[#allocation4 + $0x4] sm:$0xf] }
  0xdc   :  { %2721 = vmatpush.bf16.msra.mxu0 %v3913_v24  ;;  %2734 = vmatpush.bf16.msra.mxu1 %v4105_v32  ;;  %v1330_v3 = vpop.f32.mrf.mxu3  ;;  %v3938_v24 = vld [vmem:[#allocation4 + $0x108] sm:$0xf0] }
  0xdd   :  { %v1317_v62 = vpop.f32.mrf.mxu2  ;;  %v4130_v32 = vld [vmem:[#allocation4 + $0x288] sm:$0xf0]  ;;  %v3941_v35 = vor.u32 %v4804_v23, %v3938_v24  ;;  %v4373_v3 = vor.u32 %v4912_v61, %v4370_v1  ;;  %v4822_v23 = vld [vmem:[#allocation4 + $0x184] sm:$0xf]  ;;  %v4010_v24 = vld [vmem:[#allocation4 + $0x198] sm:$0xf0] }
  0xde   :  { %2747 = vmatpush.bf16.msra.mxu2 %v4297_v19  ;;  %v4133_v30 = vor.u32 %v4852_v26, %v4130_v32  ;;  %v3818_v19 = vld [vmem:[#allocation4 + $0x18] sm:$0xf0]  ;;  %v3992_v26 = vld [vmem:[#allocation4 + $0x158] sm:$0xf]  ;;  %v4037_v32 = vor.u32 %v4828_v10, %v4034_v12  ;;  %v4274_v61 = vld [vmem:[#allocation4 + $0x3a8] sm:$0xf0] }
  0xdf   :  { %v3821_v39 = vor.u32 %v4774_v18, %v3818_v19  ;;  %v4945_v1 = vld [vmem:[#allocation4 + $0x554] sm:$0xf0]  ;;  %v4882_v10 = vld [vmem:[#allocation4 + $0x364] sm:$0xf]  ;;  %v4796_v19 = vld [vmem:[#allocation4 + $0xac] sm:$0xf0] }
  0xe0   :  { %2722 = vmatpush.bf16.msra.mxu0 %v3889_v31  ;;  %2735 = vmatpush.bf16.msra.mxu1 %v4081_v34  ;;  %v4798_v31 = vld [vmem:[#allocation4 + $0xc4] sm:$0xf]  ;;  %v3896_v18 = vld [vmem:[#allocation4 + $0x98] sm:$0xf] }
  0xe1   :  { %v4846_v34 = vld [vmem:[#allocation4 + $0x244] sm:$0xf]  ;;  %v3917_v42 = vor.u32 %v4798_v31, %v3914_v33  ;;  %v4900_v31 = vld [vmem:[#allocation4 + $0x3f4] sm:$0xf]  ;;  %v4322_v33 = vld [vmem:[#allocation4 + $0x408] sm:$0xf0] }
  0xe2   :  { %2748 = vmatpush.bf16.msra.mxu2 %v4273_v29  ;;  %v4109_v43 = vor.u32 %v4846_v34, %v4106_v37  ;;  %v4820_v29 = vld [vmem:[#allocation4 + $0x16c] sm:$0xf0]  ;;  %v4184_v34 = vld [vmem:[#allocation4 + $0x2d8] sm:$0xf]  ;;  %v4325_v38 = vor.u32 %v4900_v31, %v4322_v33  ;;  %v3872_v33 = vld [vmem:[#allocation4 + $0x68] sm:$0xf] }
  0xe4   :  { %2723 = vmatpush.bf16.msra.mxu0 %v3865_v45  ;;  %2736 = vmatpush.bf16.msra.mxu1 %v4057_v48  ;;  %v4792_v45 = vld [vmem:[#allocation4 + $0x94] sm:$0xf] }
  0xe5   :  { %v3893_v54 = vor.u32 %v4792_v45, %v3890_v46  ;;  %v3968_v46 = vld [vmem:[#allocation4 + $0x128] sm:$0xf] }
  0xe6   :  { %2749 = vmatpush.bf16.msra.mxu2 %v4249_v40  ;;  %v4013_v40 = vor.u32 %v4822_v23, %v4010_v24  ;;  %v4844_v24 = vld [vmem:[#allocation4 + $0x22c] sm:$0xf0] }
  0xe8   :  { %2724 = vmatpush.bf16.msra.mxu0 %v3841_v56  ;;  %2737 = vmatpush.bf16.msra.mxu1 %v4033_v58  ;;  %v4085_v56 = vor.u32 %v4840_v47, %v4082_v50  ;;  %v4058_v58 = vld [vmem:[#allocation4 + $0x1f8] sm:$0xf0]  ;;  %v4814_v47 = vld [vmem:[#allocation4 + $0x13c] sm:$0xf0] }
  0xe9   :  { %v4862_v50 = vld [vmem:[#allocation4 + $0x2bc] sm:$0xf0] }
  0xea   :  { %2750 = vmatpush.bf16.msra.mxu2 %v4225_v53  ;;  %v4301_v53 = vor.u32 %v4894_v51, %v4298_v52  ;;  %v4927_v51 = vld [vmem:[#allocation4 + $0x4c4] sm:$0xf0]  ;;  %v4040_v52 = vld [vmem:[#allocation4 + $0x1b8] sm:$0xf] }
  0xec   :  { %2725 = vmatpush.bf16.msra.mxu0 %v3817_v5  ;;  %2738 = vmatpush.bf16.msra.mxu1 %v4009_v6  ;;  %v1341_v44 = vpop.f32.mrf.mxu0  ;;  %v1354_v49 = vpop.f32.mrf.mxu1  ;;  %v4061_v5 = vor.u32 %v4834_v57, %v4058_v58  ;;  %v4780_v6 = vld [vmem:[#allocation4 + $0x34] sm:$0xf]  ;;  %v4808_v57 = vld [vmem:[#allocation4 + $0x10c] sm:$0xf0]  ;;  %v4136_v58 = vld [vmem:[#allocation4 + $0x278] sm:$0xf] }
  0xed   :  { %v1342_v48 = vadd.f32 %v1341_v44, %v1329_v36  ;;  %v4868_v36 = vld [vmem:[#allocation4 + $0x2ec] sm:$0xf0]  ;;  %v4957_v44 = vld [vmem:[#allocation4 + $0x5b4] sm:$0xf0] }
  0xee   :  { %2751 = vmatpush.bf16.msra.mxu2 %v4201_v0  ;;  %v4185_v45 = vor.u32 %v4868_v36, %v4184_v34  ;;  %v4488_v0 = vld [vmem:[#allocation4 + $0x540] sm:$0xf]  ;;  %v4064_v36 = vld [vmem:[#allocation4 + $0x1e8] sm:$0xf] }
  0xef   :  { %2726 = vmatmul.bf16.vlgmr.msra.gmra.mxu0 %v5140_v21  ;;  %v1355_v41 = vadd.f32 %v1354_v49, %v1342_v48  ;;  %v4160_v48 = vld [vmem:[#allocation4 + $0x2a8] sm:$0xf]  ;;  %v4790_v34 = vld [vmem:[#allocation4 + $0x7c] sm:$0xf0] }
  0xf0   :  { %2770 = vmatpush.bf16.msrb.mxu0 %v3989_v7  ;;  %2783 = vmatpush.bf16.msrb.mxu1 %v4181_v11  ;;  %v3842_v7 = vld [vmem:[#allocation4 + $0x48] sm:$0xf0] }
  0xf2   :  { %2796 = vmatpush.bf16.msrb.mxu2 %v4373_v3  ;;  %v3920_v3 = vld [vmem:[#allocation4 + $0xc8] sm:$0xf] }
  0xf4   :  { %2771 = vmatpush.bf16.msrb.mxu0 %v3965_v22  ;;  %2784 = vmatpush.bf16.msrb.mxu1 %v4157_v8  ;;  %v1380_v63 = vpop.f32.mrf.mxu3  ;;  %v1343_v11 = vpop.f32.mrf.mxu0  ;;  %v4349_v22 = vor.u32 %v4906_v14, %v4346_v16  ;;  %v3845_v8 = vor.u32 %v4780_v6, %v3842_v7  ;;  %v4489_v6 = vor.u32 %v4945_v1, %v4488_v0  ;;  %v4850_v7 = vld [vmem:[#allocation4 + $0x25c] sm:$0xf0]  ;;  %v4464_v14 = vld [vmem:[#allocation4 + $0x510] sm:$0xf]  ;;  %v4939_v16 = vld [vmem:[#allocation4 + $0x524] sm:$0xf0] }
  0xf5   :  { %v1367_v25 = vpop.f32.mrf.mxu2  ;;  %v1356_v13 = vpop.f32.mrf.mxu1  ;;  %v4250_v11 = vld [vmem:[#allocation4 + $0x378] sm:$0xf0]  ;;  %v4465_v23 = vor.u32 %v4939_v16, %v4464_v14  ;;  %v4826_v0 = vld [vmem:[#allocation4 + $0x19c] sm:$0xf0]  ;;  %v4811_v16 = vld [vmem:[#allocation4 + $0x12c] sm:$0xf] }
  0xf6   :  { %v1368_v62 = vadd.f32 %v1367_v25, %v1355_v41  ;;  %2797 = vmatpush.bf16.msrb.mxu2 %v4349_v22  ;;  %v3969_v41 = vor.u32 %v4814_v47, %v3968_v46  ;;  %v4253_v12 = vor.u32 %v4882_v10, %v4250_v11  ;;  %v4088_v22 = vld [vmem:[#allocation4 + $0x218] sm:$0xf]  ;;  %v4784_v47 = vld [vmem:[#allocation4 + $0x4c] sm:$0xf0]  ;;  %v4817_v1 = vld [vmem:[#allocation4 + $0x15c] sm:$0xf] }
  0xf7   :  { %v4089_v31 = vor.u32 %v4844_v24, %v4088_v22  ;;  %v4162_v22 = vld [vmem:[#allocation4 + $0x2c0] sm:$0xf0] }
  0xf8   :  { %2772 = vmatpush.bf16.msrb.mxu0 %v3941_v35  ;;  %2785 = vmatpush.bf16.msrb.mxu1 %v4133_v30  ;;  %v1381_v4 = vadd.f32 %v1380_v63, %v1368_v62  ;;  %v4561_v30 = vor.u32 %v4963_v28, %v4560_v27  ;;  %v4277_v62 = vor.u32 %v4888_v60, %v4274_v61  ;;  %v4226_v27 = vld [vmem:[#allocation4 + $0x348] sm:$0xf0]  ;;  %v4016_v60 = vld [vmem:[#allocation4 + $0x188] sm:$0xf] }
  0xf9   :  { %v3945_v63 = vor.u32 %v4808_v57, %v3944_v9  ;;  %v4778_v57 = vld [vmem:[#allocation4 + $0x1c] sm:$0xf0]  ;;  %v4017_v10 = vor.u32 %v4826_v0, %v4016_v60 }
  0xfa   :  { %v1541_v17 = vmax.f32 %v1381_v4, 0.0  ;;  %2757 = vmatpush.bf16.msra.mxu3 %v4561_v30  ;;  %2798 = vmatpush.bf16.msrb.mxu2 %v4325_v38  ;;  %v4802_v4 = vld [vmem:[#allocation4 + $0xdc] sm:$0xf0]  ;;  %v4933_v30 = vld [vmem:[#allocation4 + $0x4f4] sm:$0xf0] }
  0xfb   :  { %v3921_v13 = vor.u32 %v4802_v4, %v3920_v3  ;;  %v4838_v38 = vld [vmem:[#allocation4 + $0x1fc] sm:$0xf0]  ;;  %v4865_v4 = vld [vmem:[#allocation4 + $0x2dc] sm:$0xf] }
  0xfc   :  { %2773 = vmatpush.bf16.msrb.mxu0 %v3917_v42  ;;  %2786 = vmatpush.bf16.msrb.mxu1 %v4109_v43  ;;  %1545 = vst [vmem:[%s5248_s5 + $0x8] sm:$0xff] %v1541_v17  ;;  %v5148_v15 = vpack.c.bf16 %v1541_v17, %v1541_v17  ;;  %v1382_v37 = vpop.f32.mrf.mxu3  ;;  %v3993_v42 = vor.u32 %v4820_v29, %v3992_v26  ;;  %v4536_v43 = vld [vmem:[#allocation4 + $0x5a0] sm:$0xf] }
  0xfd   :  { %v1369_v35 = vpop.f32.mrf.mxu2  ;;  %v4537_v49 = vor.u32 %v4957_v44, %v4536_v43  ;;  %v3897_v29 = vor.u32 %v4796_v19, %v3896_v18  ;;  %v3873_v43 = vor.u32 %v4790_v34, %v3872_v33  ;;  %v3848_v44 = vld [vmem:[#allocation4 + $0x38] sm:$0xf]  ;;  %v4065_v46 = vor.u32 %v4838_v38, %v4064_v36  ;;  %v4538_v18 = vld [vmem:[#allocation4 + $0x5b8] sm:$0xf0]  ;;  %v4859_v19 = vld [vmem:[#allocation4 + $0x2ac] sm:$0xf] }
  0xfe   :  { %2739 = vmatmul.bf16.vlgmr.msra.gmra.mxu1 %v5148_v15  ;;  %2799 = vmatpush.bf16.msrb.mxu2 %v4301_v53  ;;  %v4440_v35 = vld [vmem:[#allocation4 + $0x4e0] sm:$0xf]  ;;  %v4832_v53 = vld [vmem:[#allocation4 + $0x1cc] sm:$0xf0]  ;;  %v3849_v9 = vor.u32 %v4784_v47, %v3848_v44  ;;  %v4138_v33 = vld [vmem:[#allocation4 + $0x290] sm:$0xf0] }
  0xff   :  { %2758 = vmatpush.bf16.msra.mxu3 %v4537_v49  ;;  %v4441_v37 = vor.u32 %v4933_v30, %v4440_v35  ;;  %v3946_v35 = vld [vmem:[#allocation4 + $0x110] sm:$0xf0]  ;;  %v4942_v36 = vld [vmem:[#allocation4 + $0x544] sm:$0xf] }
 0x100   :  { %2774 = vmatpush.bf16.msrb.mxu0 %v3893_v54  ;;  %2787 = vmatpush.bf16.msrb.mxu1 %v4085_v56  ;;  %v4512_v54 = vld [vmem:[#allocation4 + $0x570] sm:$0xf]  ;;  %v4161_v56 = vor.u32 %v4862_v50, %v4160_v48  ;;  %v4114_v44 = vld [vmem:[#allocation4 + $0x260] sm:$0xf0] }
 0x101   :  { %v4513_v25 = vor.u32 %v4951_v55, %v4512_v54  ;;  %v4416_v50 = vld [vmem:[#allocation4 + $0x4b0] sm:$0xf]  ;;  %v262_v55 = vperm.slane %v5125_v20, 2 }
 0x102   :  { %2800 = vmatpush.bf16.msrb.mxu2 %v4277_v62  ;;  %v4417_v54 = vor.u32 %v4927_v51, %v4416_v50  ;;  %v4960_v62 = vld [vmem:[#allocation4 + $0x5d4] sm:$0xf]  ;;  %v4466_v50 = vld [vmem:[#allocation4 + $0x528] sm:$0xf0]  ;;  %v4793_v51 = vld [vmem:[#allocation4 + $0x9c] sm:$0xf] }
 0x103   :  { %2759 = vmatpush.bf16.msra.mxu3 %v4513_v25  ;;  %v4921_v25 = vld [vmem:[#allocation4 + $0x494] sm:$0xf0] }
 0x104   :  { %2775 = vmatpush.bf16.msrb.mxu0 %v3869_v2  ;;  %2788 = vmatpush.bf16.msrb.mxu1 %v4061_v5  ;;  %v4137_v2 = vor.u32 %v4856_v59, %v4136_v58  ;;  %v4112_v5 = vld [vmem:[#allocation4 + $0x248] sm:$0xf]  ;;  %v4392_v58 = vld [vmem:[#allocation4 + $0x480] sm:$0xf]  ;;  %v4041_v59 = vor.u32 %v4832_v53, %v4040_v52  ;;  %v3898_v52 = vld [vmem:[#allocation4 + $0xb0] sm:$0xf0] }
 0x105   :  { %v4113_v17 = vor.u32 %v4850_v7, %v4112_v5  ;;  %v4393_v61 = vor.u32 %v4921_v25, %v4392_v58  ;;  %v4186_v5 = vld [vmem:[#allocation4 + $0x2f0] sm:$0xf0]  ;;  %v4376_v58 = vld [vmem:[#allocation4 + $0x458] sm:$0xf]  ;;  %v4930_v25 = vld [vmem:[#allocation4 + $0x4e4] sm:$0xf] }
 0x106   :  { %2801 = vmatpush.bf16.msrb.mxu2 %v4253_v12  ;;  %v4189_v14 = vor.u32 %v4865_v4, %v4186_v5 }
 0x107   :  { %2760 = vmatpush.bf16.msra.mxu3 %v4489_v6 }
 0x108   :  { %2776 = vmatpush.bf16.msrb.mxu0 %v3845_v8  ;;  %2789 = vmatpush.bf16.msrb.mxu1 %v4037_v32  ;;  %v4876_v32 = vld [vmem:[#allocation4 + $0x334] sm:$0xf] }
 0x109   :  { %v4229_v28 = vor.u32 %v4876_v32, %v4226_v27  ;;  %v4948_v32 = vld [vmem:[#allocation4 + $0x574] sm:$0xf]  ;;  %v4514_v27 = vld [vmem:[#allocation4 + $0x588] sm:$0xf0] }
 0x10a   :  { %v4517_v30 = vor.u32 %v4948_v32, %v4514_v27 }
 0x10b   :  { %2761 = vmatpush.bf16.msra.mxu3 %v4465_v23  ;;  %2802 = vmatpush.bf16.msrb.mxu2 %v4229_v28  ;;  %v4165_v28 = vor.u32 %v4859_v19, %v4162_v22  ;;  %v4418_v22 = vld [vmem:[#allocation4 + $0x4c8] sm:$0xf0] }
 0x10c   :  { %2777 = vmatpush.bf16.msrb.mxu0 %v3821_v39  ;;  %2790 = vmatpush.bf16.msrb.mxu1 %v4013_v40  ;;  %v1393_v8 = vpop.f32.mrf.mxu0  ;;  %v5153_v26 = vpop.f32.mrf.mxu1  ;;  %v4870_v39 = vld [vmem:[#allocation4 + $0x304] sm:$0xf]  ;;  %v4202_v40 = vld [vmem:[#allocation4 + $0x318] sm:$0xf0] }
 0x10d   :  { %v1394_v20 = vadd.f32 %v1393_v8, %v262_v55  ;;  %v4090_v55 = vld [vmem:[#allocation4 + $0x230] sm:$0xf0] }
 0x10f   :  { %2778 = vmatmul.bf16.vlgmr.msrb.gmra.mxu0 %v5140_v21  ;;  %2791 = vmatmul.bf16.vlgmr.msrb.gmra.mxu1 %v5148_v15  ;;  %v1407_v24 = vadd.f32 %v5153_v26, %v1394_v20  ;;  %v4352_v20 = vld [vmem:[#allocation4 + $0x428] sm:$0xf] }
 0x110   :  { %2822 = vmatpush.bf16.msra.mxu0 %v3993_v42  ;;  %2835 = vmatpush.bf16.msra.mxu1 %v4185_v45  ;;  %v4205_v42 = vor.u32 %v4870_v39, %v4202_v40  ;;  %v4799_v39 = vld [vmem:[#allocation4 + $0xcc] sm:$0xf]  ;;  %v3922_v40 = vld [vmem:[#allocation4 + $0xe0] sm:$0xf0] }
 0x111   :  { %2762 = vmatpush.bf16.msra.mxu3 %v4441_v37  ;;  %v4490_v37 = vld [vmem:[#allocation4 + $0x558] sm:$0xf0]  ;;  %v3925_v47 = vor.u32 %v4799_v39, %v3922_v40  ;;  %v4192_v39 = vld [vmem:[#allocation4 + $0x2e0] sm:$0xf]  ;;  %v4869_v40 = vld [vmem:[#allocation4 + $0x2f4] sm:$0xf0] }
 0x112   :  { %2803 = vmatpush.bf16.msrb.mxu2 %v4205_v42  ;;  %v4493_v42 = vor.u32 %v4942_v36, %v4490_v37  ;;  %v4000_v36 = vld [vmem:[#allocation4 + $0x160] sm:$0xf]  ;;  %v4821_v37 = vld [vmem:[#allocation4 + $0x174] sm:$0xf0] }
 0x114   :  { %2823 = vmatpush.bf16.msra.mxu0 %v3969_v41  ;;  %2836 = vmatpush.bf16.msra.mxu1 %v4161_v56  ;;  %v1395_v48 = vpop.f32.mrf.mxu0  ;;  %v5157_v49 = vpop.f32.mrf.mxu3  ;;  %v3824_v56 = vld [vmem:[#allocation4 + $0x8] sm:$0xf] }
 0x115   :  { %v5155_v45 = vpop.f32.mrf.mxu2  ;;  %v1408_v41 = vpop.f32.mrf.mxu1  ;;  %2763 = vmatpush.bf16.msra.mxu3 %v4417_v54  ;;  %v3825_v6 = vor.u32 %v4778_v57, %v3824_v56  ;;  %v4936_v48 = vld [vmem:[#allocation4 + $0x514] sm:$0xf]  ;;  %v4841_v54 = vld [vmem:[#allocation4 + $0x21c] sm:$0xf]  ;;  %v3901_v57 = vor.u32 %v4793_v51, %v3898_v52  ;;  %v3976_v52 = vld [vmem:[#allocation4 + $0x130] sm:$0xf] }
 0x116   :  { %v1420_v26 = vadd.f32 %v5155_v45, %v1407_v24  ;;  %v4469_v53 = vor.u32 %v4936_v48, %v4466_v50  ;;  %v4093_v60 = vor.u32 %v4841_v54, %v4090_v55  ;;  %v4328_v24 = vld [vmem:[#allocation4 + $0x3f8] sm:$0xf]  ;;  %v4304_v48 = vld [vmem:[#allocation4 + $0x3c8] sm:$0xf]  ;;  %v4898_v50 = vld [vmem:[#allocation4 + $0x3dc] sm:$0xf0] }
 0x117   :  { %v4863_v54 = vld [vmem:[#allocation4 + $0x2c4] sm:$0xf0]  ;;  %v4305_v55 = vor.u32 %v4898_v50, %v4304_v48  ;;  %v3856_v48 = vld [vmem:[#allocation4 + $0x40] sm:$0xf]  ;;  %v4785_v50 = vld [vmem:[#allocation4 + $0x54] sm:$0xf0] }
 0x118   :  { %2824 = vmatpush.bf16.msra.mxu0 %v3945_v63  ;;  %2837 = vmatpush.bf16.msra.mxu1 %v4137_v2  ;;  %v4562_v63 = vld [vmem:[#allocation4 + $0x5e8] sm:$0xf0]  ;;  %v3994_v2 = vld [vmem:[#allocation4 + $0x170] sm:$0xf0] }
 0x119   :  { %v4565_v3 = vor.u32 %v4960_v62, %v4562_v63  ;;  %2764 = vmatpush.bf16.msra.mxu3 %v4393_v61  ;;  %v3997_v11 = vor.u32 %v4817_v1, %v3994_v2  ;;  %v4916_v61 = vld [vmem:[#allocation4 + $0x46c] sm:$0xf0]  ;;  %v4787_v62 = vld [vmem:[#allocation4 + $0x6c] sm:$0xf]  ;;  %v3874_v63 = vld [vmem:[#allocation4 + $0x80] sm:$0xf0] }
 0x11a   :  { %v4835_v1 = vld [vmem:[#allocation4 + $0x1ec] sm:$0xf]  ;;  %v4066_v2 = vld [vmem:[#allocation4 + $0x200] sm:$0xf0]  ;;  %v4377_v4 = vor.u32 %v4916_v61, %v4376_v58  ;;  %v3877_v5 = vor.u32 %v4787_v62, %v3874_v63  ;;  %v4144_v61 = vld [vmem:[#allocation4 + $0x280] sm:$0xf] }
 0x11b   :  { %v4857_v62 = vld [vmem:[#allocation4 + $0x294] sm:$0xf0] }
 0x11c   :  { %2825 = vmatpush.bf16.msra.mxu0 %v3921_v13  ;;  %2838 = vmatpush.bf16.msra.mxu1 %v4113_v17  ;;  %v1434_v12 = vpop.f32.mrf.mxu3  ;;  %v4954_v13 = vld [vmem:[#allocation4 + $0x5a4] sm:$0xf] }
 0x11d   :  { %v1421_v7 = vpop.f32.mrf.mxu2  ;;  %2809 = vmatpush.bf16.msrb.mxu3 %v4565_v3  ;;  %v3970_v17 = vld [vmem:[#allocation4 + $0x140] sm:$0xf0]  ;;  %v4541_v23 = vor.u32 %v4954_v13, %v4538_v18  ;;  %v3850_v13 = vld [vmem:[#allocation4 + $0x50] sm:$0xf0] }
 0x11e   :  { %v3973_v8 = vor.u32 %v4811_v16, %v3970_v17  ;;  %v4781_v7 = vld [vmem:[#allocation4 + $0x3c] sm:$0xf]  ;;  %v4042_v18 = vld [vmem:[#allocation4 + $0x1d0] sm:$0xf0] }
 0x11f   :  { %v4829_v17 = vld [vmem:[#allocation4 + $0x1bc] sm:$0xf]  ;;  %v3853_v27 = vor.u32 %v4781_v7, %v3850_v13  ;;  %v4851_v7 = vld [vmem:[#allocation4 + $0x264] sm:$0xf0] }
 0x120   :  { %2826 = vmatpush.bf16.msra.mxu0 %v3897_v29  ;;  %2839 = vmatpush.bf16.msra.mxu1 %v4089_v31  ;;  %v4805_v29 = vld [vmem:[#allocation4 + $0xfc] sm:$0xf] }
 0x121   :  { %2810 = vmatpush.bf16.msrb.mxu3 %v4541_v23  ;;  %v4853_v31 = vld [vmem:[#allocation4 + $0x27c] sm:$0xf]  ;;  %v3949_v34 = vor.u32 %v4805_v29, %v3946_v35  ;;  %v4775_v29 = vld [vmem:[#allocation4 + $0xc] sm:$0xf]  ;;  %v3826_v35 = vld [vmem:[#allocation4 + $0x20] sm:$0xf0] }
 0x122   :  { %v4141_v38 = vor.u32 %v4853_v31, %v4138_v33  ;;  %v4823_v31 = vld [vmem:[#allocation4 + $0x18c] sm:$0xf]  ;;  %v4918_v33 = vld [vmem:[#allocation4 + $0x484] sm:$0xf] }
 0x124   :  { %2827 = vmatpush.bf16.msra.mxu0 %v3873_v43  ;;  %2840 = vmatpush.bf16.msra.mxu1 %v4065_v46  ;;  %v4847_v43 = vld [vmem:[#allocation4 + $0x24c] sm:$0xf]  ;;  %v1433_v46 = vadd.f32 %v5157_v49, %v1420_v26  ;;  %v4442_v49 = vld [vmem:[#allocation4 + $0x4f8] sm:$0xf0] }
 0x125   :  { %2811 = vmatpush.bf16.msrb.mxu3 %v4517_v30  ;;  %v4117_v45 = vor.u32 %v4847_v43, %v4114_v44  ;;  %v4445_v0 = vor.u32 %v4930_v25, %v4442_v49  ;;  %v4045_v30 = vor.u32 %v4829_v17, %v4042_v18  ;;  %v4394_v26 = vld [vmem:[#allocation4 + $0x498] sm:$0xf0]  ;;  %v3829_v43 = vor.u32 %v4775_v29, %v3826_v35  ;;  %v3952_v25 = vld [vmem:[#allocation4 + $0x100] sm:$0xf]  ;;  %v4809_v49 = vld [vmem:[#allocation4 + $0x114] sm:$0xf0] }
 0x126   :  { %v4880_v17 = vld [vmem:[#allocation4 + $0x34c] sm:$0xf0]  ;;  %v4208_v35 = vld [vmem:[#allocation4 + $0x308] sm:$0xf] }
 0x128   :  { %2828 = vmatpush.bf16.msra.mxu0 %v3849_v9  ;;  %2841 = vmatpush.bf16.msra.mxu1 %v4041_v59 }
 0x129   :  { %2812 = vmatpush.bf16.msrb.mxu3 %v4493_v42 }
 0x12c   :  { %2829 = vmatpush.bf16.msra.mxu0 %v3825_v6  ;;  %2842 = vmatpush.bf16.msra.mxu1 %v4017_v10  ;;  %v1445_v41 = vpop.f32.mrf.mxu0  ;;  %v1458_v9 = vpop.f32.mrf.mxu1  ;;  %v4910_v6 = vld [vmem:[#allocation4 + $0x43c] sm:$0xf0] }
 0x12d   :  { %v1446_v56 = vadd.f32 %v1445_v41, %v1433_v46  ;;  %2813 = vmatpush.bf16.msrb.mxu3 %v4469_v53  ;;  %v4353_v32 = vor.u32 %v4910_v6, %v4352_v20  ;;  %v4001_v46 = vor.u32 %v4821_v37, %v4000_v36  ;;  %v4815_v53 = vld [vmem:[#allocation4 + $0x144] sm:$0xf0]  ;;  %v4168_v41 = vld [vmem:[#allocation4 + $0x2b0] sm:$0xf] }
 0x12e   :  { %v4169_v58 = vor.u32 %v4863_v54, %v4168_v41  ;;  %v4120_v6 = vld [vmem:[#allocation4 + $0x250] sm:$0xf]  ;;  %v4791_v36 = vld [vmem:[#allocation4 + $0x84] sm:$0xf0]  ;;  %v4833_v41 = vld [vmem:[#allocation4 + $0x1d4] sm:$0xf0] }
 0x12f   :  { %2830 = vmatmul.bf16.vlgmr.msra.gmra.mxu0 %v5140_v21  ;;  %2843 = vmatmul.bf16.vlgmr.msra.gmra.mxu1 %v5148_v15  ;;  %v1459_v59 = vadd.f32 %v1458_v9, %v1446_v56  ;;  %v3977_v56 = vor.u32 %v4815_v53, %v3976_v52  ;;  %v4280_v9 = vld [vmem:[#allocation4 + $0x398] sm:$0xf]  ;;  %v4121_v18 = vor.u32 %v4851_v7, %v4120_v6  ;;  %v4072_v37 = vld [vmem:[#allocation4 + $0x1f0] sm:$0xf]  ;;  %v4048_v53 = vld [vmem:[#allocation4 + $0x1c0] sm:$0xf] }
 0x130   :  { %2874 = vmatpush.bf16.msrb.mxu0 %v3997_v11  ;;  %2887 = vmatpush.bf16.msrb.mxu1 %v4189_v14  ;;  %v4069_v11 = vor.u32 %v4835_v1, %v4066_v2  ;;  %v4924_v14 = vld [vmem:[#allocation4 + $0x4b4] sm:$0xf]  ;;  %v4256_v1 = vld [vmem:[#allocation4 + $0x368] sm:$0xf]  ;;  %v4886_v2 = vld [vmem:[#allocation4 + $0x37c] sm:$0xf0] }
 0x131   :  { %v1542_v3 = vmax.f32 %v1459_v59, 0.0  ;;  %2814 = vmatpush.bf16.msrb.mxu3 %v4445_v0  ;;  %v4972_v59 = vld [vmem:[%s5245_s2] sm:$0xf]  ;;  %v3953_v0 = vor.u32 %v4809_v49, %v3952_v25  ;;  %v4901_v25 = vld [vmem:[#allocation4 + $0x3fc] sm:$0xf] }
 0x132   :  { %v4330_v49 = vld [vmem:[#allocation4 + $0x410] sm:$0xf0] }
 0x133   :  { %1546 = vst [vmem:[%s5248_s5 + $0x10] sm:$0xff] %v1542_v3  ;;  %v5168_v10 = vpack.c.bf16 %v1542_v3, %v1542_v3  ;;  %v4145_v3 = vor.u32 %v4857_v62, %v4144_v61  ;;  %v4779_v61 = vld [vmem:[#allocation4 + $0x24] sm:$0xf0]  ;;  %v4024_v62 = vld [vmem:[#allocation4 + $0x190] sm:$0xf]  ;;  %v4333_v6 = vor.u32 %v4901_v25, %v4330_v49 }
 0x134   :  { %2875 = vmatpush.bf16.msrb.mxu0 %v3973_v8  ;;  %2888 = vmatpush.bf16.msrb.mxu1 %v4165_v28  ;;  %v5172_v16 = vpop.f32.mrf.mxu3  ;;  %v1447_v19 = vpop.f32.mrf.mxu0  ;;  %v4421_v8 = vor.u32 %v4924_v14, %v4418_v22  ;;  %v4904_v28 = vld [vmem:[#allocation4 + $0x40c] sm:$0xf0]  ;;  %v4232_v14 = vld [vmem:[#allocation4 + $0x338] sm:$0xf]  ;;  %v4794_v25 = vld [vmem:[#allocation4 + $0xa4] sm:$0xf] }
 0x135   :  { %v5170_v12 = vpop.f32.mrf.mxu2  ;;  %2752 = vmatmul.bf16.vlgmr.msra.gmra.mxu2 %v5168_v10  ;;  %v1460_v23 = vpop.f32.mrf.mxu1  ;;  %v4329_v42 = vor.u32 %v4904_v28, %v4328_v24  ;;  %v3904_v19 = vld [vmem:[#allocation4 + $0xa0] sm:$0xf]  ;;  %v4797_v22 = vld [vmem:[#allocation4 + $0xb4] sm:$0xf0]  ;;  %v3906_v49 = vld [vmem:[#allocation4 + $0xb8] sm:$0xf0] }
 0x136   :  { %2848 = vmatpush.bf16.msra.mxu2 %v4377_v4  ;;  %2815 = vmatpush.bf16.msrb.mxu3 %v4421_v8  ;;  %v3928_v4 = vld [vmem:[#allocation4 + $0xd0] sm:$0xf]  ;;  %v4096_v8 = vld [vmem:[#allocation4 + $0x220] sm:$0xf]  ;;  %v3905_v29 = vor.u32 %v4797_v22, %v3904_v19  ;;  %v4895_v19 = vld [vmem:[#allocation4 + $0x3cc] sm:$0xf] }
 0x137   :  { %v4306_v22 = vld [vmem:[#allocation4 + $0x3e0] sm:$0xf0] }
 0x138   :  { %2876 = vmatpush.bf16.msrb.mxu0 %v3949_v34  ;;  %2889 = vmatpush.bf16.msrb.mxu1 %v4141_v38  ;;  %v4018_v34 = vld [vmem:[#allocation4 + $0x1a0] sm:$0xf0]  ;;  %v4397_v38 = vor.u32 %v4918_v33, %v4394_v26  ;;  %v4378_v26 = vld [vmem:[#allocation4 + $0x470] sm:$0xf0] }
 0x139   :  { %v4021_v44 = vor.u32 %v4823_v31, %v4018_v34  ;;  %v4913_v31 = vld [vmem:[#allocation4 + $0x45c] sm:$0xf]  ;;  %v3880_v34 = vld [vmem:[#allocation4 + $0x70] sm:$0xf] }
 0x13a   :  { %2849 = vmatpush.bf16.msra.mxu2 %v4353_v32  ;;  %2816 = vmatpush.bf16.msrb.mxu3 %v4397_v38  ;;  %v4845_v32 = vld [vmem:[#allocation4 + $0x234] sm:$0xf0]  ;;  %v4839_v38 = vld [vmem:[#allocation4 + $0x204] sm:$0xf0] }
 0x13b   :  { %v4097_v33 = vor.u32 %v4845_v32, %v4096_v8  ;;  %v4812_v8 = vld [vmem:[#allocation4 + $0x134] sm:$0xf]  ;;  %v3978_v32 = vld [vmem:[#allocation4 + $0x148] sm:$0xf0] }
 0x13c   :  { %2877 = vmatpush.bf16.msrb.mxu0 %v3925_v47  ;;  %2890 = vmatpush.bf16.msrb.mxu1 %v4117_v45  ;;  %v4193_v45 = vor.u32 %v4869_v40, %v4192_v39  ;;  %v1486_v51 = vpop.f32.mrf.mxu3  ;;  %v4381_v40 = vor.u32 %v4913_v31, %v4378_v26  ;;  %v3981_v31 = vor.u32 %v4812_v8, %v3978_v32  ;;  %v4282_v26 = vld [vmem:[#allocation4 + $0x3b0] sm:$0xf0]  ;;  %v4360_v32 = vld [vmem:[#allocation4 + $0x430] sm:$0xf] }
 0x13d   :  { %v1473_v47 = vpop.f32.mrf.mxu2 }
 0x13e   :  { %2850 = vmatpush.bf16.msra.mxu2 %v4329_v42  ;;  %v3881_v42 = vor.u32 %v4791_v36, %v3880_v34  ;;  %v4354_v47 = vld [vmem:[#allocation4 + $0x440] sm:$0xf0] }
 0x13f   :  { %v4806_v36 = vld [vmem:[#allocation4 + $0x104] sm:$0xf] }
 0x140   :  { %2878 = vmatpush.bf16.msrb.mxu0 %v3901_v57  ;;  %2891 = vmatpush.bf16.msrb.mxu1 %v4093_v60  ;;  %v4892_v57 = vld [vmem:[#allocation4 + $0x3ac] sm:$0xf0]  ;;  %v263_v60 = vperm.slane %v4972_v59, 3 }
 0x141   :  { %v4281_v63 = vor.u32 %v4892_v57, %v4280_v9  ;;  %v3832_v59 = vld [vmem:[#allocation4 + $0x10] sm:$0xf] }
 0x142   :  { %2851 = vmatpush.bf16.msra.mxu2 %v4305_v55  ;;  %v1472_v20 = vadd.f32 %v5170_v12, %v263_v60  ;;  %v4568_v55 = vld [vmem:[#allocation4 + $0x5d8] sm:$0xf]  ;;  %v4049_v60 = vor.u32 %v4833_v41, %v4048_v53  ;;  %v3833_v7 = vor.u32 %v4779_v61, %v3832_v59  ;;  %v4122_v53 = vld [vmem:[#allocation4 + $0x268] sm:$0xf0]  ;;  %v4098_v61 = vld [vmem:[#allocation4 + $0x238] sm:$0xf0] }
 0x144   :  { %2879 = vmatpush.bf16.msrb.mxu0 %v3877_v5  ;;  %2892 = vmatpush.bf16.msrb.mxu1 %v4069_v11  ;;  %v4803_v5 = vld [vmem:[#allocation4 + $0xe4] sm:$0xf0]  ;;  %v4257_v11 = vor.u32 %v4886_v2, %v4256_v1  ;;  %v1485_v23 = vadd.f32 %v5172_v16, %v1472_v20  ;;  %v4818_v1 = vld [vmem:[#allocation4 + $0x164] sm:$0xf]  ;;  %v4002_v2 = vld [vmem:[#allocation4 + $0x178] sm:$0xf0] }
 0x145   :  { %2804 = vmatmul.bf16.vlgmr.msrb.gmra.mxu2 %v5168_v10  ;;  %v3929_v13 = vor.u32 %v4803_v5, %v3928_v4  ;;  %v4866_v4 = vld [vmem:[#allocation4 + $0x2e4] sm:$0xf]  ;;  %v4194_v5 = vld [vmem:[#allocation4 + $0x2f8] sm:$0xf0] }
 0x146   :  { %2852 = vmatpush.bf16.msra.mxu2 %v4281_v63  ;;  %v4827_v63 = vld [vmem:[#allocation4 + $0x1a4] sm:$0xf0] }
 0x148   :  { %2880 = vmatpush.bf16.msrb.mxu0 %v3853_v27  ;;  %2893 = vmatpush.bf16.msrb.mxu1 %v4045_v30  ;;  %v4233_v27 = vor.u32 %v4880_v17, %v4232_v14  ;;  %v4874_v30 = vld [vmem:[#allocation4 + $0x31c] sm:$0xf0]  ;;  %v4025_v17 = vor.u32 %v4827_v63, %v4024_v62 }
 0x149   :  { %v4209_v16 = vor.u32 %v4874_v30, %v4208_v35  ;;  %v4520_v35 = vld [vmem:[#allocation4 + $0x578] sm:$0xf]  ;;  %v4952_v30 = vld [vmem:[#allocation4 + $0x58c] sm:$0xf0] }
 0x14a   :  { %2853 = vmatpush.bf16.msra.mxu2 %v4257_v11  ;;  %v4544_v11 = vld [vmem:[#allocation4 + $0x5a8] sm:$0xf] }
 0x14c   :  { %2881 = vmatpush.bf16.msrb.mxu0 %v3829_v43  ;;  %2894 = vmatpush.bf16.msrb.mxu1 %v4021_v44  ;;  %v1497_v24 = vpop.f32.mrf.mxu0  ;;  %v1510_v12 = vpop.f32.mrf.mxu1  ;;  %v4907_v43 = vld [vmem:[#allocation4 + $0x42c] sm:$0xf] }
 0x14d   :  { %v1498_v28 = vadd.f32 %v1497_v24, %v1485_v23  ;;  %v4357_v57 = vor.u32 %v4907_v43, %v4354_v47  ;;  %v4197_v24 = vor.u32 %v4866_v4, %v4194_v5  ;;  %v4946_v43 = vld [vmem:[#allocation4 + $0x55c] sm:$0xf0]  ;;  %v4258_v47 = vld [vmem:[#allocation4 + $0x380] sm:$0xf0] }
 0x14e   :  { %2854 = vmatpush.bf16.msra.mxu2 %v4233_v27  ;;  %v4860_v27 = vld [vmem:[#allocation4 + $0x2b4] sm:$0xf]  ;;  %v4210_v4 = vld [vmem:[#allocation4 + $0x320] sm:$0xf0]  ;;  %v4384_v5 = vld [vmem:[#allocation4 + $0x460] sm:$0xf] }
 0x14f   :  { %2882 = vmatmul.bf16.vlgmr.msrb.gmra.mxu0 %v5140_v21  ;;  %2895 = vmatmul.bf16.vlgmr.msrb.gmra.mxu1 %v5148_v15  ;;  %v1511_v39 = vadd.f32 %v1510_v12, %v1498_v28  ;;  %v4170_v28 = vld [vmem:[#allocation4 + $0x2c8] sm:$0xf0] }
 0x150   :  { %2926 = vmatpush.bf16.msra.mxu0 %v4001_v46  ;;  %2939 = vmatpush.bf16.msra.mxu1 %v4193_v45  ;;  %v4073_v46 = vor.u32 %v4839_v38, %v4072_v37  ;;  %v4173_v34 = vor.u32 %v4860_v27, %v4170_v28  ;;  %v3954_v37 = vld [vmem:[#allocation4 + $0x118] sm:$0xf0]  ;;  %v4521_v38 = vor.u32 %v4952_v30, %v4520_v35  ;;  %v4911_v27 = vld [vmem:[#allocation4 + $0x444] sm:$0xf0]  ;;  %v4782_v28 = vld [vmem:[#allocation4 + $0x44] sm:$0xf] }
 0x151   :  { %v4830_v30 = vld [vmem:[#allocation4 + $0x1c4] sm:$0xf] }
 0x152   :  { %2855 = vmatpush.bf16.msra.mxu2 %v4209_v16  ;;  %v4854_v16 = vld [vmem:[#allocation4 + $0x284] sm:$0xf] }
 0x154   :  { %2927 = vmatpush.bf16.msra.mxu0 %v3977_v56  ;;  %2940 = vmatpush.bf16.msra.mxu1 %v4169_v58  ;;  %v1523_v44 = vpop.f32.mrf.mxu2  ;;  %v1536_v51 = vpop.f32.mrf.mxu3  ;;  %v4964_v56 = vld [vmem:[#allocation4 + $0x5ec] sm:$0xf0]  ;;  %v3857_v58 = vor.u32 %v4785_v50, %v3856_v48  ;;  %v4800_v50 = vld [vmem:[#allocation4 + $0xd4] sm:$0xf] }
 0x155   :  { %v1524_v45 = vadd.f32 %v1523_v44, %v1511_v39  ;;  %v1499_v52 = vpop.f32.mrf.mxu0  ;;  %v1512_v54 = vpop.f32.mrf.mxu1  ;;  %2856 = vmatmul.bf16.vlgmr.msra.gmra.mxu2 %v5168_v10  ;;  %v4146_v39 = vld [vmem:[#allocation4 + $0x298] sm:$0xf0]  ;;  %v3957_v44 = vor.u32 %v4806_v36, %v3954_v37  ;;  %v4361_v36 = vor.u32 %v4911_v27, %v4360_v32  ;;  %v4914_v32 = vld [vmem:[#allocation4 + $0x464] sm:$0xf] }
 0x156   :  { %2900 = vmatpush.bf16.msrb.mxu2 %v4381_v40  ;;  %v4149_v48 = vor.u32 %v4854_v16, %v4146_v39  ;;  %v4848_v52 = vld [vmem:[#allocation4 + $0x254] sm:$0xf]  ;;  %v4472_v54 = vld [vmem:[#allocation4 + $0x518] sm:$0xf]  ;;  %v4336_v39 = vld [vmem:[#allocation4 + $0x400] sm:$0xf] }
 0x157   :  { %v1537_v9 = vadd.f32 %v1536_v51, %v1524_v45  ;;  %v3930_v45 = vld [vmem:[#allocation4 + $0xe8] sm:$0xf0]  ;;  %v4570_v16 = vld [vmem:[#allocation4 + $0x5f0] sm:$0xf0] }
 0x158   :  { %2928 = vmatpush.bf16.msra.mxu0 %v3953_v0  ;;  %2941 = vmatpush.bf16.msra.mxu1 %v4145_v3  ;;  %v4569_v3 = vor.u32 %v4964_v56, %v4568_v55  ;;  %v4940_v55 = vld [vmem:[#allocation4 + $0x52c] sm:$0xf0]  ;;  %v3933_v56 = vor.u32 %v4800_v50, %v3930_v45  ;;  %v5199_v45 = vld [vmem:[%s5247_s4] sm:$0x3f] }
 0x159   :  { %v1543_v0 = vmax.f32 %v1537_v9, 0.0  ;;  %v4877_v9 = vld [vmem:[#allocation4 + $0x33c] sm:$0xf]  ;;  %v4473_v59 = vor.u32 %v4940_v55, %v4472_v54  ;;  %v4312_v55 = vld [vmem:[#allocation4 + $0x3d0] sm:$0xf]  ;;  %v1747_v27 = vperm.slane %v5199_v45, 1 }
 0x15a   :  { %2901 = vmatpush.bf16.msrb.mxu2 %v4357_v57  ;;  %v4234_v57 = vld [vmem:[#allocation4 + $0x350] sm:$0xf0] }
 0x15b   :  { %1547 = vst [vmem:[%s5248_s5 + $0x18] sm:$0xff] %v1543_v0  ;;  %v5187_v20 = vpack.c.bf16 %v1543_v0, %v1543_v0  ;;  %v4237_v63 = vor.u32 %v4877_v9, %v4234_v57  ;;  %v4448_v0 = vld [vmem:[#allocation4 + $0x4e8] sm:$0xf]  ;;  %v1746_v9 = vperm.slane %v5199_v45, 0 }
 0x15c   :  { %2929 = vmatpush.bf16.msra.mxu0 %v3929_v13  ;;  %2942 = vmatpush.bf16.msra.mxu1 %v4121_v18  ;;  %v4958_v13 = vld [vmem:[#allocation4 + $0x5bc] sm:$0xf0]  ;;  %v1525_v14 = vpop.f32.mrf.mxu2  ;;  %v4005_v18 = vor.u32 %v4818_v1, %v4002_v2  ;;  %v1538_v23 = vpop.f32.mrf.mxu3  ;;  %v3909_v2 = vor.u32 %v4794_v25, %v3906_v49  ;;  %v4949_v25 = vld [vmem:[#allocation4 + $0x57c] sm:$0xf]  ;;  %v4522_v49 = vld [vmem:[#allocation4 + $0x590] sm:$0xf0] }
 0x15d   :  { %2765 = vmatmul.bf16.vlgmr.msra.gmra.mxu3 %v5187_v20  ;;  %v4545_v12 = vor.u32 %v4958_v13, %v4544_v11  ;;  %v4934_v1 = vld [vmem:[#allocation4 + $0x4fc] sm:$0xf0]  ;;  %v4788_v11 = vld [vmem:[#allocation4 + $0x74] sm:$0xf]  ;;  %v3882_v13 = vld [vmem:[#allocation4 + $0x88] sm:$0xf0] }
 0x15e   :  { %2861 = vmatpush.bf16.msra.mxu3 %v4569_v3  ;;  %2902 = vmatpush.bf16.msrb.mxu2 %v4333_v6  ;;  %v4871_v3 = vld [vmem:[#allocation4 + $0x30c] sm:$0xf]  ;;  %v4449_v14 = vor.u32 %v4934_v1, %v4448_v0  ;;  %v4928_v23 = vld [vmem:[#allocation4 + $0x4cc] sm:$0xf0]  ;;  %v3885_v8 = vor.u32 %v4788_v11, %v3882_v13  ;;  %v4474_v13 = vld [vmem:[#allocation4 + $0x530] sm:$0xf0] }
 0x160   :  { %2930 = vmatpush.bf16.msra.mxu0 %v3905_v29  ;;  %2943 = vmatpush.bf16.msra.mxu1 %v4097_v33  ;;  %v4309_v29 = vor.u32 %v4895_v19, %v4306_v22  ;;  %v4889_v33 = vld [vmem:[#allocation4 + $0x39c] sm:$0xf]  ;;  %v4213_v19 = vor.u32 %v4871_v3, %v4210_v4  ;;  %v4424_v22 = vld [vmem:[#allocation4 + $0x4b8] sm:$0xf]  ;;  %v4498_v3 = vld [vmem:[#allocation4 + $0x560] sm:$0xf0] }
 0x161   :  { %v4285_v40 = vor.u32 %v4889_v33, %v4282_v26  ;;  %v4425_v35 = vor.u32 %v4928_v23, %v4424_v22  ;;  %v4400_v26 = vld [vmem:[#allocation4 + $0x488] sm:$0xf]  ;;  %v4931_v22 = vld [vmem:[#allocation4 + $0x4ec] sm:$0xf]  ;;  %v4450_v23 = vld [vmem:[#allocation4 + $0x500] sm:$0xf0] }
 0x162   :  { %2862 = vmatpush.bf16.msra.mxu3 %v4545_v12  ;;  %2903 = vmatpush.bf16.msrb.mxu2 %v4309_v29  ;;  %v3858_v29 = vld [vmem:[#allocation4 + $0x58] sm:$0xf0] }
 0x163   :  { %v3861_v37 = vor.u32 %v4782_v28, %v3858_v29  ;;  %v4453_v28 = vor.u32 %v4931_v22, %v4450_v23  ;;  %v4872_v22 = vld [vmem:[#allocation4 + $0x314] sm:$0xf]  ;;  %v4218_v23 = vld [vmem:[#allocation4 + $0x328] sm:$0xf0] }
 0x164   :  { %2931 = vmatpush.bf16.msra.mxu0 %v3881_v42  ;;  %2944 = vmatpush.bf16.msra.mxu1 %v4073_v46  ;;  %v4496_v42 = vld [vmem:[#allocation4 + $0x548] sm:$0xf]  ;;  %v4883_v46 = vld [vmem:[#allocation4 + $0x36c] sm:$0xf] }
 0x165   :  { %v4497_v51 = vor.u32 %v4946_v43, %v4496_v42  ;;  %v4261_v41 = vor.u32 %v4883_v46, %v4258_v47  ;;  %v4905_v42 = vld [vmem:[#allocation4 + $0x414] sm:$0xf0]  ;;  %v4776_v43 = vld [vmem:[#allocation4 + $0x14] sm:$0xf] }
 0x166   :  { %2863 = vmatpush.bf16.msra.mxu3 %v4521_v38  ;;  %2904 = vmatpush.bf16.msrb.mxu2 %v4285_v40  ;;  %v4961_v38 = vld [vmem:[#allocation4 + $0x5dc] sm:$0xf]  ;;  %v4824_v47 = vld [vmem:[#allocation4 + $0x194] sm:$0xf] }
 0x167   :  { %v4573_v50 = vor.u32 %v4961_v38, %v4570_v16  ;;  %v4919_v16 = vld [vmem:[#allocation4 + $0x48c] sm:$0xf] }
 0x168   :  { %2932 = vmatpush.bf16.msra.mxu0 %v3857_v58  ;;  %2945 = vmatpush.bf16.msra.mxu1 %v4049_v60  ;;  %v4125_v58 = vor.u32 %v4848_v52, %v4122_v53  ;;  %v4842_v60 = vld [vmem:[#allocation4 + $0x224] sm:$0xf]  ;;  %v4955_v53 = vld [vmem:[#allocation4 + $0x5ac] sm:$0xf] }
 0x169   :  { %v4101_v6 = vor.u32 %v4842_v60, %v4098_v61  ;;  %v4893_v60 = vld [vmem:[#allocation4 + $0x3b4] sm:$0xf0] }
 0x16a   :  { %2864 = vmatpush.bf16.msra.mxu3 %v4497_v51  ;;  %2905 = vmatpush.bf16.msrb.mxu2 %v4261_v41  ;;  %v4337_v51 = vor.u32 %v4905_v42, %v4336_v39  ;;  %v4546_v41 = vld [vmem:[#allocation4 + $0x5c0] sm:$0xf0] }
 0x16b   :  { %v4549_v57 = vor.u32 %v4955_v53, %v4546_v41  ;;  %v4402_v39 = vld [vmem:[#allocation4 + $0x4a0] sm:$0xf0]  ;;  %v4959_v53 = vld [vmem:[#allocation4 + $0x5c4] sm:$0xf0]  ;;  %v4896_v41 = vld [vmem:[#allocation4 + $0x3d4] sm:$0xf] }
 0x16c   :  { %2933 = vmatpush.bf16.msra.mxu0 %v3833_v7  ;;  %2946 = vmatpush.bf16.msra.mxu1 %v4025_v17  ;;  %v5192_v62 = vpop.f32.mrf.mxu0  ;;  %v4917_v7 = vld [vmem:[#allocation4 + $0x474] sm:$0xf0]  ;;  %v4836_v17 = vld [vmem:[#allocation4 + $0x1f4] sm:$0xf] }
 0x16d   :  { %2817 = vmatmul.bf16.vlgmr.msrb.gmra.mxu3 %v5187_v20  ;;  %v2728_v61 = vadd.f32 %v5192_v62, %v1746_v9  ;;  %v4937_v62 = vld [vmem:[#allocation4 + $0x51c] sm:$0xf] }
 0x16e   :  { %2865 = vmatpush.bf16.msra.mxu3 %v4473_v59  ;;  %2906 = vmatpush.bf16.msrb.mxu2 %v4237_v63  ;;  %v4288_v59 = vld [vmem:[#allocation4 + $0x3a0] sm:$0xf]  ;;  %v4525_v63 = vor.u32 %v4949_v25, %v4522_v49  ;;  %v4890_v25 = vld [vmem:[#allocation4 + $0x3a4] sm:$0xf]  ;;  %v4290_v49 = vld [vmem:[#allocation4 + $0x3b8] sm:$0xf0] }
 0x16f   :  { %2934 = vmatmul.bf16.vlgmr.msra.gmra.mxu0 %v5140_v21  ;;  %2947 = vmatmul.bf16.vlgmr.msra.gmra.mxu1 %v5148_v15  ;;  %v4289_v1 = vor.u32 %v4893_v60, %v4288_v59  ;;  %v4293_v60 = vor.u32 %v4890_v25, %v4290_v49  ;;  %v4926_v25 = vld [vmem:[#allocation4 + $0x4c4] sm:$0xf]  ;;  %v4434_v49 = vld [vmem:[#allocation4 + $0x4d8] sm:$0xf0] }
 0x170   :  { %2978 = vmatpush.bf16.msrb.mxu0 %v4005_v18  ;;  %2991 = vmatpush.bf16.msrb.mxu1 %v4197_v24  ;;  %v4074_v18 = vld [vmem:[#allocation4 + $0x208] sm:$0xf0]  ;;  %v4385_v24 = vor.u32 %v4917_v7, %v4384_v5  ;;  %v4264_v5 = vld [vmem:[#allocation4 + $0x370] sm:$0xf] }
 0x171   :  { %v4077_v12 = vor.u32 %v4836_v17, %v4074_v18  ;;  %v4477_v17 = vor.u32 %v4937_v62, %v4474_v13  ;;  %v4242_v62 = vld [vmem:[#allocation4 + $0x358] sm:$0xf0] }
 0x172   :  { %2866 = vmatpush.bf16.msra.mxu3 %v4449_v14  ;;  %2907 = vmatpush.bf16.msrb.mxu2 %v4213_v19  ;;  %v4240_v14 = vld [vmem:[#allocation4 + $0x340] sm:$0xf] }
 0x174   :  { %2979 = vmatpush.bf16.msrb.mxu0 %v3981_v31  ;;  %2992 = vmatpush.bf16.msrb.mxu1 %v4173_v34  ;;  %v4050_v31 = vld [vmem:[#allocation4 + $0x1d8] sm:$0xf0]  ;;  %v2729_v33 = vpop.f32.mrf.mxu0  ;;  %v4922_v34 = vld [vmem:[#allocation4 + $0x49c] sm:$0xf0] }
 0x175   :  { %v4053_v40 = vor.u32 %v4830_v30, %v4050_v31  ;;  %2908 = vmatmul.bf16.vlgmr.msrb.gmra.mxu2 %v5168_v10  ;;  %v4401_v46 = vor.u32 %v4922_v34, %v4400_v26  ;;  %v4426_v30 = vld [vmem:[#allocation4 + $0x4d0] sm:$0xf0]  ;;  %v4362_v26 = vld [vmem:[#allocation4 + $0x448] sm:$0xf0] }
 0x176   :  { %2952 = vmatpush.bf16.msra.mxu2 %v4385_v24  ;;  %2867 = vmatpush.bf16.msra.mxu3 %v4425_v35  ;;  %v4216_v24 = vld [vmem:[#allocation4 + $0x310] sm:$0xf]  ;;  %v4925_v35 = vld [vmem:[#allocation4 + $0x4bc] sm:$0xf]  ;;  %v4908_v33 = vld [vmem:[#allocation4 + $0x434] sm:$0xf] }
 0x177   :  { %v4365_v42 = vor.u32 %v4908_v33, %v4362_v26  ;;  %v4962_v33 = vld [vmem:[#allocation4 + $0x5e4] sm:$0xf]  ;;  %v4578_v26 = vld [vmem:[#allocation4 + $0x5f8] sm:$0xf0] }
 0x178   :  { %2980 = vmatpush.bf16.msrb.mxu0 %v3957_v44  ;;  %2993 = vmatpush.bf16.msrb.mxu1 %v4149_v48  ;;  %v3834_v44 = vld [vmem:[#allocation4 + $0x28] sm:$0xf0] }
 0x179   :  { %v4026_v48 = vld [vmem:[#allocation4 + $0x1a8] sm:$0xf0]  ;;  %v3837_v52 = vor.u32 %v4776_v43, %v3834_v44  ;;  %v4576_v43 = vld [vmem:[#allocation4 + $0x5e0] sm:$0xf]  ;;  %v4965_v44 = vld [vmem:[#allocation4 + $0x5f4] sm:$0xf0] }
 0x17a   :  { %2953 = vmatpush.bf16.msra.mxu2 %v4361_v36  ;;  %v4029_v54 = vor.u32 %v4824_v47, %v4026_v48  ;;  %2868 = vmatpush.bf16.msra.mxu3 %v4401_v46  ;;  %v4429_v36 = vor.u32 %v4925_v35, %v4426_v30  ;;  %v4902_v46 = vld [vmem:[#allocation4 + $0x404] sm:$0xf]  ;;  %v4338_v47 = vld [vmem:[#allocation4 + $0x418] sm:$0xf0]  ;;  %v4405_v48 = vor.u32 %v4919_v16, %v4402_v39  ;;  %v4408_v35 = vld [vmem:[#allocation4 + $0x490] sm:$0xf] }
 0x17b   :  { %v2740_v0 = vpop.f32.mrf.mxu1  ;;  %v4923_v30 = vld [vmem:[#allocation4 + $0x4a4] sm:$0xf0]  ;;  %v4950_v39 = vld [vmem:[#allocation4 + $0x584] sm:$0xf] }
 0x17c   :  { %2981 = vmatpush.bf16.msrb.mxu0 %v3933_v56  ;;  %2994 = vmatpush.bf16.msrb.mxu1 %v4125_v58  ;;  %v4899_v56 = vld [vmem:[#allocation4 + $0x3e4] sm:$0xf0]  ;;  %v5206_v4 = vadd.f32 %v2740_v0, %v2728_v61  ;;  %v4504_v61 = vld [vmem:[#allocation4 + $0x550] sm:$0xf]  ;;  %v4884_v0 = vld [vmem:[#allocation4 + $0x374] sm:$0xf] }
 0x17d   :  { %v4313_v58 = vor.u32 %v4899_v56, %v4312_v55  ;;  %2869 = vmatmul.bf16.vlgmr.msra.gmra.mxu3 %v5187_v20 }
 0x17e   :  { %2913 = vmatpush.bf16.msrb.mxu3 %v4573_v50  ;;  %2954 = vmatpush.bf16.msra.mxu2 %v4337_v51  ;;  %v4577_v50 = vor.u32 %v4965_v44, %v4576_v43  ;;  %v4341_v51 = vor.u32 %v4902_v46, %v4338_v47  ;;  %v4944_v44 = vld [vmem:[#allocation4 + $0x554] sm:$0xf]  ;;  %v4506_v46 = vld [vmem:[#allocation4 + $0x568] sm:$0xf0] }
 0x180   :  { %2982 = vmatpush.bf16.msrb.mxu0 %v3909_v2  ;;  %2995 = vmatpush.bf16.msrb.mxu1 %v4101_v6  ;;  %v4943_v2 = vld [vmem:[#allocation4 + $0x54c] sm:$0xf]  ;;  %v4887_v6 = vld [vmem:[#allocation4 + $0x384] sm:$0xf0] }
 0x181   :  { %v4501_v7 = vor.u32 %v4943_v2, %v4498_v3  ;;  %v4265_v11 = vor.u32 %v4887_v6, %v4264_v5  ;;  %v4480_v5 = vld [vmem:[#allocation4 + $0x520] sm:$0xf]  ;;  %v4941_v6 = vld [vmem:[#allocation4 + $0x534] sm:$0xf0] }
 0x182   :  { %2914 = vmatpush.bf16.msrb.mxu3 %v4549_v57  ;;  %2955 = vmatpush.bf16.msra.mxu2 %v4313_v58  ;;  %v4528_v57 = vld [vmem:[#allocation4 + $0x580] sm:$0xf]  ;;  %v4953_v58 = vld [vmem:[#allocation4 + $0x594] sm:$0xf0]  ;;  %v4481_v13 = vor.u32 %v4941_v6, %v4480_v5  ;;  %v1750_v6 = vperm.slane %v5199_v45, 4 }
 0x183   :  { %v2742_v18 = vpop.f32.mrf.mxu1  ;;  %v4529_v59 = vor.u32 %v4953_v58, %v4528_v57 }
 0x184   :  { %2983 = vmatpush.bf16.msrb.mxu0 %v3885_v8  ;;  %2996 = vmatpush.bf16.msrb.mxu1 %v4077_v12  ;;  %v4875_v8 = vld [vmem:[#allocation4 + $0x324] sm:$0xf0]  ;;  %v4386_v12 = vld [vmem:[#allocation4 + $0x478] sm:$0xf0] }
 0x185   :  { %v4217_v29 = vor.u32 %v4875_v8, %v4216_v24  ;;  %v4389_v31 = vor.u32 %v4914_v32, %v4386_v12  ;;  %v4221_v32 = vor.u32 %v4872_v22, %v4218_v23  ;;  %v4432_v12 = vld [vmem:[#allocation4 + $0x4c0] sm:$0xf] }
 0x186   :  { %2915 = vmatpush.bf16.msrb.mxu3 %v4525_v63  ;;  %2956 = vmatpush.bf16.msra.mxu2 %v4289_v1  ;;  %v4947_v63 = vld [vmem:[#allocation4 + $0x564] sm:$0xf0]  ;;  %v4266_v1 = vld [vmem:[#allocation4 + $0x388] sm:$0xf0] }
 0x187   :  { %v4505_v2 = vor.u32 %v4947_v63, %v4504_v61  ;;  %v4269_v3 = vor.u32 %v4884_v0, %v4266_v1  ;;  %v4920_v61 = vld [vmem:[#allocation4 + $0x494] sm:$0xf]  ;;  %v4410_v63 = vld [vmem:[#allocation4 + $0x4a8] sm:$0xf0] }
 0x188   :  { %2984 = vmatpush.bf16.msrb.mxu0 %v3861_v37  ;;  %2997 = vmatpush.bf16.msrb.mxu1 %v4053_v40 }
 0x18a   :  { %2916 = vmatpush.bf16.msrb.mxu3 %v4501_v7  ;;  %2957 = vmatpush.bf16.msra.mxu2 %v4265_v11  ;;  %v1748_v7 = vperm.slane %v5199_v45, 2  ;;  %v4878_v11 = vld [vmem:[#allocation4 + $0x344] sm:$0xf] }
 0x18c   :  { %2985 = vmatpush.bf16.msrb.mxu0 %v3837_v52  ;;  %2998 = vmatpush.bf16.msrb.mxu1 %v4029_v54  ;;  %v2792_v38 = vpop.f32.mrf.mxu1  ;;  %v4552_v52 = vld [vmem:[#allocation4 + $0x5b0] sm:$0xf]  ;;  %v4314_v54 = vld [vmem:[#allocation4 + $0x3e8] sm:$0xf0] }
 0x18d   :  { %v4553_v56 = vor.u32 %v4959_v53, %v4552_v52  ;;  %v4317_v9 = vor.u32 %v4896_v41, %v4314_v54  ;;  %v4932_v41 = vld [vmem:[#allocation4 + $0x4f4] sm:$0xf]  ;;  %v4458_v54 = vld [vmem:[#allocation4 + $0x508] sm:$0xf0] }
 0x18e   :  { %2917 = vmatpush.bf16.msrb.mxu3 %v4477_v17  ;;  %v4456_v17 = vld [vmem:[#allocation4 + $0x4f0] sm:$0xf]  ;;  %v4461_v58 = vor.u32 %v4932_v41, %v4458_v54 }
 0x18f   :  { %2986 = vmatmul.bf16.vlgmr.msrb.gmra.mxu0 %v5140_v21  ;;  %2999 = vmatmul.bf16.vlgmr.msrb.gmra.mxu1 %v5148_v15  ;;  %v4881_v21 = vld [vmem:[#allocation4 + $0x354] sm:$0xf0]  ;;  %v2779_v15 = vpop.f32.mrf.mxu0 }
 0x190   :  { %v4241_v19 = vor.u32 %v4881_v21, %v4240_v14  ;;  %v2780_v34 = vadd.f32 %v2779_v15, %v1747_v27  ;;  %v4245_v21 = vor.u32 %v4878_v11, %v4242_v62  ;;  %v4935_v15 = vld [vmem:[#allocation4 + $0x504] sm:$0xf0]  ;;  %v4929_v27 = vld [vmem:[#allocation4 + $0x4d4] sm:$0xf0] }
 0x191   :  { %v4457_v8 = vor.u32 %v4935_v15, %v4456_v17 }
 0x192   :  { %2958 = vmatpush.bf16.msra.mxu2 %v4241_v19  ;;  %2918 = vmatpush.bf16.msrb.mxu3 %v4453_v28  ;;  %v5209_v40 = vadd.f32 %v2792_v38, %v2780_v34  ;;  %v4433_v28 = vor.u32 %v4929_v27, %v4432_v12  ;;  %v4409_v34 = vor.u32 %v4923_v30, %v4408_v35  ;;  %v4554_v38 = vld [vmem:[#allocation4 + $0x5c8] sm:$0xf0]  ;;  %v1751_v12 = vperm.slane %v5199_v45, 5 }
 0x194   :  { %v2794_v55 = vpop.f32.mrf.mxu1 }
 0x196   :  { %2959 = vmatpush.bf16.msra.mxu2 %v4217_v29  ;;  %2919 = vmatpush.bf16.msrb.mxu3 %v4429_v36  ;;  %v4581_v36 = vor.u32 %v4962_v33, %v4578_v26 }
 0x197   :  { %v2781_v37 = vpop.f32.mrf.mxu0 }
 0x198   :  { %v4956_v37 = vld [vmem:[#allocation4 + $0x5b4] sm:$0xf] }
 0x199   :  { %2960 = vmatmul.bf16.vlgmr.msra.gmra.mxu2 %v5168_v10  ;;  %v4557_v16 = vor.u32 %v4956_v37, %v4554_v38 }
 0x19a   :  { %3004 = vmatpush.bf16.msrb.mxu2 %v4389_v31  ;;  %2920 = vmatpush.bf16.msrb.mxu3 %v4405_v48  ;;  %v4509_v48 = vor.u32 %v4944_v44, %v4506_v46 }
 0x19d   :  { %2921 = vmatmul.bf16.vlgmr.msrb.gmra.mxu3 %v5187_v20 }
 0x19e   :  { %3005 = vmatpush.bf16.msrb.mxu2 %v4365_v42  ;;  %2965 = vmatpush.bf16.msra.mxu3 %v4577_v50  ;;  %v4530_v42 = vld [vmem:[#allocation4 + $0x598] sm:$0xf0]  ;;  %v4938_v50 = vld [vmem:[#allocation4 + $0x524] sm:$0xf] }
 0x19f   :  { %v4533_v43 = vor.u32 %v4950_v39, %v4530_v42 }
 0x1a2   :  { %3006 = vmatpush.bf16.msrb.mxu2 %v4341_v51  ;;  %2966 = vmatpush.bf16.msra.mxu3 %v4553_v56  ;;  %v1749_v51 = vperm.slane %v5199_v45, 3 }
 0x1a6   :  { %3007 = vmatpush.bf16.msrb.mxu2 %v4317_v9  ;;  %2967 = vmatpush.bf16.msra.mxu3 %v4529_v59  ;;  %v4437_v59 = vor.u32 %v4926_v25, %v4434_v49 }
 0x1aa   :  { %3008 = vmatpush.bf16.msrb.mxu2 %v4293_v60  ;;  %2968 = vmatpush.bf16.msra.mxu3 %v4505_v2  ;;  %v4413_v2 = vor.u32 %v4920_v61, %v4410_v63 }
 0x1ac   :  { %v2831_v14 = vpop.f32.mrf.mxu0  ;;  %v2844_v19 = vpop.f32.mrf.mxu1 }
 0x1ad   :  { %v2832_v18 = vadd.f32 %v2831_v14, %v1748_v7 }
 0x1ae   :  { %3009 = vmatpush.bf16.msrb.mxu2 %v4269_v3  ;;  %2969 = vmatpush.bf16.msra.mxu3 %v4481_v13 }
 0x1af   :  { %v5214_v24 = vadd.f32 %v2844_v19, %v2832_v18 }
 0x1b2   :  { %3010 = vmatpush.bf16.msrb.mxu2 %v4245_v21  ;;  %2970 = vmatpush.bf16.msra.mxu3 %v4457_v8 }
 0x1b4   :  { %v2833_v29 = vpop.f32.mrf.mxu0  ;;  %v2846_v31 = vpop.f32.mrf.mxu1 }
 0x1b6   :  { %3011 = vmatpush.bf16.msrb.mxu2 %v4221_v32  ;;  %2971 = vmatpush.bf16.msra.mxu3 %v4433_v28 }
 0x1b8   :  { %v2753_v47 = vpop.f32.mrf.mxu2 }
 0x1b9   :  { %3012 = vmatmul.bf16.vlgmr.msrb.gmra.mxu2 %v5168_v10  ;;  %v4482_v10 = vld [vmem:[#allocation4 + $0x538] sm:$0xf0]  ;;  %v2754_v7 = vadd.f32 %v2753_v47, %v5206_v4 }
 0x1ba   :  { %2972 = vmatpush.bf16.msra.mxu3 %v4409_v34  ;;  %v4485_v52 = vor.u32 %v4938_v50, %v4482_v10 }
 0x1bd   :  { %2973 = vmatmul.bf16.vlgmr.msra.gmra.mxu3 %v5187_v20 }
 0x1be   :  { %3017 = vmatpush.bf16.msrb.mxu3 %v4581_v36 }
 0x1c0   :  { %v2755_v9 = vpop.f32.mrf.mxu2 }
 0x1c2   :  { %3018 = vmatpush.bf16.msrb.mxu3 %v4557_v16 }
 0x1c6   :  { %3019 = vmatpush.bf16.msrb.mxu3 %v4533_v43 }
 0x1c8   :  { %v2805_v1 = vpop.f32.mrf.mxu2 }
 0x1c9   :  { %v2806_v22 = vadd.f32 %v2805_v1, %v5209_v40 }
 0x1ca   :  { %3020 = vmatpush.bf16.msrb.mxu3 %v4509_v48 }
 0x1cc   :  { %v2883_v53 = vpop.f32.mrf.mxu0  ;;  %v2896_v56 = vpop.f32.mrf.mxu1 }
 0x1cd   :  { %v2884_v55 = vadd.f32 %v2883_v53, %v1749_v51 }
 0x1ce   :  { %3021 = vmatpush.bf16.msrb.mxu3 %v4485_v52 }
 0x1cf   :  { %v2897_v57 = vadd.f32 %v2896_v56, %v2884_v55 }
 0x1d0   :  { %v2807_v3 = vpop.f32.mrf.mxu2 }
 0x1d2   :  { %3022 = vmatpush.bf16.msrb.mxu3 %v4461_v58 }
 0x1d4   :  { %v2885_v60 = vpop.f32.mrf.mxu0  ;;  %v2898_v0 = vpop.f32.mrf.mxu1 }
 0x1d6   :  { %3023 = vmatpush.bf16.msrb.mxu3 %v4437_v59 }
 0x1d8   :  { %v2857_v5 = vpop.f32.mrf.mxu2 }
 0x1d9   :  { %v2858_v35 = vadd.f32 %v2857_v5, %v5214_v24 }
 0x1da   :  { %3024 = vmatpush.bf16.msrb.mxu3 %v4413_v2 }
 0x1dd   :  { %3025 = vmatmul.bf16.vlgmr.msrb.gmra.mxu3 %v5187_v20 }
 0x1e0   :  { %v2766_v14 = vpop.f32.mrf.mxu3  ;;  %v2859_v15 = vpop.f32.mrf.mxu2 }
 0x1e1   :  { %v2767_v21 = vadd.f32 %v2766_v14, %v2754_v7 }
 0x1e3   :  { %3030 = vst [vmem:[%s5249_s6] sm:$0xff] %v2767_v21 }
 0x1e8   :  { %v2768_v20 = vpop.f32.mrf.mxu3 }
 0x1ec   :  { %v2935_v11 = vpop.f32.mrf.mxu0  ;;  %v2948_v13 = vpop.f32.mrf.mxu1 }
 0x1ed   :  { %v2936_v62 = vadd.f32 %v2935_v11, %v1750_v6 }
 0x1ef   :  { %v2949_v17 = vadd.f32 %v2948_v13, %v2936_v62 }
 0x1f0   :  { %v2818_v23 = vpop.f32.mrf.mxu3 }
 0x1f1   :  { %v2819_v8 = vadd.f32 %v2818_v23, %v2806_v22 }
 0x1f3   :  { %3031 = vst [vmem:[%s5249_s6 + $0x8] sm:$0xff] %v2819_v8 }
 0x1f4   :  { %v2937_v18 = vpop.f32.mrf.mxu0  ;;  %v2950_v19 = vpop.f32.mrf.mxu1 }
 0x1f8   :  { %v2820_v4 = vpop.f32.mrf.mxu3  ;;  %v2909_v32 = vpop.f32.mrf.mxu2 }
 0x1f9   :  { %v2910_v38 = vadd.f32 %v2909_v32, %v2897_v57 }
 0x200   :  { %v2870_v31 = vpop.f32.mrf.mxu3  ;;  %v2911_v26 = vpop.f32.mrf.mxu2 }
 0x201   :  { %v2871_v33 = vadd.f32 %v2870_v31, %v2858_v35 }
 0x203   :  { %3032 = vst [vmem:[%s5249_s6 + $0x10] sm:$0xff] %v2871_v33 }
 0x208   :  { %v2872_v36 = vpop.f32.mrf.mxu3 }
 0x20c   :  { %v2987_v27 = vpop.f32.mrf.mxu0  ;;  %v3000_v29 = vpop.f32.mrf.mxu1 }
 0x20d   :  { %v2988_v28 = vadd.f32 %v2987_v27, %v1751_v12 }
 0x20f   :  { %v3001_v30 = vadd.f32 %v3000_v29, %v2988_v28 }
 0x214   :  { %v2989_v40 = vpop.f32.mrf.mxu0  ;;  %v3002_v34 = vpop.f32.mrf.mxu1 }
 0x21c   :  { %v2961_v37 = vpop.f32.mrf.mxu2 }
 0x21d   :  { %v2962_v43 = vadd.f32 %v2961_v37, %v2949_v17 }
 0x220   :  { %v2922_v16 = vpop.f32.mrf.mxu3 }
 0x221   :  { %v2923_v45 = vadd.f32 %v2922_v16, %v2910_v38 }
 0x223   :  { %3033 = vst [vmem:[%s5249_s6 + $0x18] sm:$0xff] %v2923_v45 }
 0x224   :  { %v2963_v39 = vpop.f32.mrf.mxu2 }
 0x228   :  { %v2924_v24 = vpop.f32.mrf.mxu3 }
 0x23c   :  { %v3013_v42 = vpop.f32.mrf.mxu2 }
 0x23d   :  { %v3014_v50 = vadd.f32 %v3013_v42, %v3001_v30 }
 0x240   :  { %v2974_v44 = vpop.f32.mrf.mxu3 }
 0x241   :  { %v2975_v46 = vadd.f32 %v2974_v44, %v2962_v43 }
 0x243   :  { %3034 = vst [vmem:[%s5249_s6 + $0x20] sm:$0xff] %v2975_v46 }
 0x244   :  { %v3015_v47 = vpop.f32.mrf.mxu2 }
 0x248   :  { %v2976_v48 = vpop.f32.mrf.mxu3 }
 0x260   :  { %v3026_v10 = vpop.f32.mrf.mxu3 }
 0x261   :  { %v3027_v51 = vadd.f32 %v3026_v10, %v3014_v50 }
 0x263   :  { %3035 = vst [vmem:[%s5249_s6 + $0x28] sm:$0xff] %v3027_v51 }
 0x268   :  { %v3028_v52 = vpop.f32.mrf.mxu3 }
 0x269   :  { %3044 = vsyncpa [#allocation3], 1 }
 0x26a   :  { %3045 = vsyncpa [#allocation5], 1 }

</bundles_post_ra>
